<compile_context>
chip_gen: v7x
topology: tpu7x:2x2x1
jax: 0.10.0
libtpu: 0.0.40
codegen_flags: <defaults>
</compile_context>

<pallas_src>
import functools

import jax
import jax.numpy as jnp
from jax import lax
from jax.experimental import pallas as pl
from jax.experimental.pallas import tpu as pltpu


# ----------------------------------------------------------------------------
# Fused conv chain: four valid 2-D convolutions (C_in = C_out = 1, stride 1,
# no padding) executed back-to-back inside a single kernel. Weights/biases
# live flattened in SMEM; intermediates never leave vregs.
# ----------------------------------------------------------------------------
def _conv_chain_kernel(w_ref, b_ref, x_ref, o_ref, *, ks):
    h = x_ref[...]                                   # single VMEM load: (N, 16, 16)
    off = 0
    for stage, K in enumerate(ks):                   # static -> fully unrolled
        Hi, Wi = h.shape[1], h.shape[2]
        Ho, Wo = Hi - K + 1, Wi - K + 1
        acc = jnp.zeros((h.shape[0], Ho, Wo), jnp.float32)
        for ki in range(K):
            for kj in range(K):
                # value slicing of the in-register tensor (no per-tap Ref loads)
                acc = acc + w_ref[off + ki * K + kj] * h[:, ki:ki + Ho, kj:kj + Wo]
        h = acc + b_ref[stage]
        off += K * K
    o_ref[...] = h                                   # (N, 4, 4)


def conv_chain(x1, params):
    """x1: (N, 1, 16, 16) f32 -> (N, 1, 4, 4) f32 via 3x3 -> 5x5 -> 5x5 -> 3x3."""
    N, _, H, W = x1.shape
    stages = [
        params["green_conv"],
        params["white_conv"],
        params["white_module"]["conv"],
        params["white_module"]["sub_green_conv"],
    ]
    ks = tuple(int(w.shape[0]) for (w, _) in stages)            # (3, 5, 5, 3)
    w_all = jnp.concatenate([w.reshape(-1) for (w, _) in stages])   # (68,) SMEM
    b_all = jnp.concatenate([b for (_, b) in stages])               # (4,)  SMEM
    Ho = H - sum(k - 1 for k in ks)                             # 4
    Wo = W - sum(k - 1 for k in ks)                             # 4

    kernel = functools.partial(_conv_chain_kernel, ks=ks)
    out = pl.pallas_call(
        kernel,
        out_shape=jax.ShapeDtypeStruct((N, Ho, Wo), jnp.float32),
        in_specs=[
            pl.BlockSpec(memory_space=pltpu.MemorySpace.SMEM),   # flattened weights
            pl.BlockSpec(memory_space=pltpu.MemorySpace.SMEM),   # biases
            pl.BlockSpec((N, H, W), lambda: (0, 0, 0)),          # input (full block)
        ],
        out_specs=pl.BlockSpec((N, Ho, Wo), lambda: (0, 0, 0)),
    )(w_all, b_all, x1[:, 0])
    return out[:, None]                                          # (N, 1, 4, 4)


# ----------------------------------------------------------------------------
# Fused double BatchNorm2d (training mode: batch statistics, biased variance,
# eps = 1e-5, per-channel affine). Operates on a free (N, C, H*W) reshape view:
# H*W = 256 is lane-dense, C sits on sublanes; per-channel stats reduce over
# axes (0, 2). Both normalizations happen on the VMEM-resident slab.
# ----------------------------------------------------------------------------
def _double_bn_kernel(x_ref, g1_ref, b1_ref, g2_ref, b2_ref, o_ref, *, eps):
    def bn(x, g, b):
        # per-channel mean/var over (N, H*W); nested reduces keep lowering simple
        mean = jnp.mean(jnp.mean(x, axis=2, keepdims=True), axis=0, keepdims=True)
        d = x - mean
        var = jnp.mean(jnp.mean(d * d, axis=2, keepdims=True), axis=0, keepdims=True)
        return d * lax.rsqrt(var + eps) * g + b

    x = x_ref[...]                                   # (N, C, H*W)
    y = bn(x, g1_ref[...], b1_ref[...])              # green_bn
    o_ref[...] = bn(y, g2_ref[...], b2_ref[...])     # white_bn


def double_batchnorm(x, gb1, gb2, eps=1e-5):
    """x: (N, C, H, W) f32 -> (N, C, H, W) f32, two training-mode BNs fused."""
    N, C, H, W = x.shape
    M = H * W
    xr = x.reshape(N, C, M)                          # free view, no transpose
    g1 = gb1[0].reshape(1, C, 1)
    b1 = gb1[1].reshape(1, C, 1)
    g2 = gb2[0].reshape(1, C, 1)
    b2 = gb2[1].reshape(1, C, 1)

    kernel = functools.partial(_double_bn_kernel, eps=eps)
    out = pl.pallas_call(
        kernel,
        out_shape=jax.ShapeDtypeStruct((N, C, M), jnp.float32),
        in_specs=[
            pl.BlockSpec((N, C, M), lambda: (0, 0, 0)),
            pl.BlockSpec((1, C, 1), lambda: (0, 0, 0)),
            pl.BlockSpec((1, C, 1), lambda: (0, 0, 0)),
            pl.BlockSpec((1, C, 1), lambda: (0, 0, 0)),
            pl.BlockSpec((1, C, 1), lambda: (0, 0, 0)),
        ],
        out_specs=pl.BlockSpec((N, C, M), lambda: (0, 0, 0)),
    )(xr, g1, b1, g2, b2)
    return out.reshape(N, C, H, W)                   # free view back


# ----------------------------------------------------------------------------
# Deterministic parameter init (mimics PyTorch defaults: Conv2d weights/bias
# U(-1/sqrt(fan_in), 1/sqrt(fan_in)); BatchNorm2d gamma=1, beta=0).
# TODO(synk): running_mean/running_var tracking of torch BN is not implemented
# (forward-only, training-mode batch statistics are used).
# ----------------------------------------------------------------------------
def init_conv_params(key, k):
    bound = 1.0 / (k * k) ** 0.5
    kw, kb = jax.random.split(key)
    w = jax.random.uniform(kw, (k, k), jnp.float32, -bound, bound)
    b = jax.random.uniform(kb, (1,), jnp.float32, -bound, bound)
    return w, b


def init_mock_module_params(key):
    keys = jax.random.split(key, 4)
    return {
        "green_conv": init_conv_params(keys[0], 3),             # Conv2d(1,1,3)
        "white_conv": init_conv_params(keys[1], 5),             # Conv2d(1,1,5)
        "green_bn": (jnp.ones((16,), jnp.float32), jnp.zeros((16,), jnp.float32)),
        "white_bn": (jnp.ones((16,), jnp.float32), jnp.zeros((16,), jnp.float32)),
        "white_module": {
            "conv": init_conv_params(keys[2], 5),               # Conv2d(1,1,5)
            "sub_green_conv": init_conv_params(keys[3], 3),     # Conv2d(1,1,3)
        },
    }


@jax.jit
def mock_module_forward(params, x1, x2):
    """x1: (N, 1, 16, 16) conv-path input; x2: (N, 16, 16, 16) bn-path input."""
    conv_out = conv_chain(x1, params)                                   # (N, 1, 4, 4)
    bn_out = double_batchnorm(x2, params["green_bn"], params["white_bn"])  # (N,16,16,16)
    return conv_out, bn_out


if __name__ == "__main__":
    key = jax.random.PRNGKey(0)
    kp, k1, k2 = jax.random.split(key, 3)

    params = init_mock_module_params(kp)
    x1 = jax.random.normal(k1, (2, 1, 16, 16), jnp.float32)    # conv-path input
    x2 = jax.random.normal(k2, (2, 16, 16, 16), jnp.float32)   # batchnorm-path input

    conv_out, bn_out = mock_module_forward(params, x1, x2)
    jax.block_until_ready((conv_out, bn_out))

    assert conv_out.shape == (2, 1, 4, 4)
    assert bn_out.shape == (2, 16, 16, 16)
    print("KERNEL_OK")
</pallas_src>

<mosaic_0001>
module attributes {stable_mosaic.version = 11 : i64} {
  func.func @_double_bn_kernel(%arg0: memref<2x16x256xf32, #tpu.memory_space<vmem>>, %arg1: memref<1x16x1xf32, #tpu.memory_space<vmem>>, %arg2: memref<1x16x1xf32, #tpu.memory_space<vmem>>, %arg3: memref<1x16x1xf32, #tpu.memory_space<vmem>>, %arg4: memref<1x16x1xf32, #tpu.memory_space<vmem>>, %arg5: memref<2x16x256xf32, #tpu.memory_space<vmem>>) attributes {dimension_semantics = [], scalar_prefetch = 0 : i64, scratch_operands = 0 : i64, tpu.core_type = #tpu.core_type<tc>} {
    %c0 = arith.constant 0 : index
    %c0_0 = arith.constant 0 : index
    %c0_1 = arith.constant 0 : index
    %0 = vector.load %arg0[%c0, %c0_0, %c0_1] : memref<2x16x256xf32, #tpu.memory_space<vmem>>, vector<2x16x256xf32>
    %c0_2 = arith.constant 0 : index
    %c0_3 = arith.constant 0 : index
    %c0_4 = arith.constant 0 : index
    %1 = vector.load %arg1[%c0_2, %c0_3, %c0_4] : memref<1x16x1xf32, #tpu.memory_space<vmem>>, vector<1x16x1xf32>
    %c0_5 = arith.constant 0 : index
    %c0_6 = arith.constant 0 : index
    %c0_7 = arith.constant 0 : index
    %2 = vector.load %arg2[%c0_5, %c0_6, %c0_7] : memref<1x16x1xf32, #tpu.memory_space<vmem>>, vector<1x16x1xf32>
    %cst = arith.constant dense<0.000000e+00> : vector<2x16xf32>
    %3 = vector.multi_reduction <add>, %0, %cst [2] : vector<2x16x256xf32> to vector<2x16xf32>
    %4 = vector.shape_cast %3 : vector<2x16xf32> to vector<2x16x1xf32>
    %cst_8 = arith.constant 2.560000e+02 : f32
    %5 = vector.broadcast %cst_8 : f32 to vector<2x16x1xf32>
    %6 = arith.divf %4, %5 : vector<2x16x1xf32>
    %cst_9 = arith.constant dense<0.000000e+00> : vector<16x1xf32>
    %7 = vector.multi_reduction <add>, %6, %cst_9 [0] : vector<2x16x1xf32> to vector<16x1xf32>
    %8 = vector.shape_cast %7 : vector<16x1xf32> to vector<1x16x1xf32>
    %cst_10 = arith.constant 2.000000e+00 : f32
    %9 = vector.broadcast %cst_10 : f32 to vector<1x16x1xf32>
    %10 = arith.divf %8, %9 : vector<1x16x1xf32>
    %11 = vector.broadcast %10 : vector<1x16x1xf32> to vector<2x16x256xf32>
    %12 = arith.subf %0, %11 : vector<2x16x256xf32>
    %13 = arith.mulf %12, %12 : vector<2x16x256xf32>
    %cst_11 = arith.constant dense<0.000000e+00> : vector<2x16xf32>
    %14 = vector.multi_reduction <add>, %13, %cst_11 [2] : vector<2x16x256xf32> to vector<2x16xf32>
    %15 = vector.shape_cast %14 : vector<2x16xf32> to vector<2x16x1xf32>
    %cst_12 = arith.constant 2.560000e+02 : f32
    %16 = vector.broadcast %cst_12 : f32 to vector<2x16x1xf32>
    %17 = arith.divf %15, %16 : vector<2x16x1xf32>
    %cst_13 = arith.constant dense<0.000000e+00> : vector<16x1xf32>
    %18 = vector.multi_reduction <add>, %17, %cst_13 [0] : vector<2x16x1xf32> to vector<16x1xf32>
    %19 = vector.shape_cast %18 : vector<16x1xf32> to vector<1x16x1xf32>
    %cst_14 = arith.constant 2.000000e+00 : f32
    %20 = vector.broadcast %cst_14 : f32 to vector<1x16x1xf32>
    %21 = arith.divf %19, %20 : vector<1x16x1xf32>
    %cst_15 = arith.constant 9.99999974E-6 : f32
    %22 = vector.broadcast %cst_15 : f32 to vector<1x16x1xf32>
    %23 = arith.addf %21, %22 : vector<1x16x1xf32>
    %24 = math.rsqrt %23 : vector<1x16x1xf32>
    %25 = vector.broadcast %24 : vector<1x16x1xf32> to vector<2x16x256xf32>
    %26 = arith.mulf %12, %25 : vector<2x16x256xf32>
    %27 = vector.broadcast %1 : vector<1x16x1xf32> to vector<2x16x256xf32>
    %28 = arith.mulf %26, %27 : vector<2x16x256xf32>
    %29 = vector.broadcast %2 : vector<1x16x1xf32> to vector<2x16x256xf32>
    %30 = arith.addf %28, %29 : vector<2x16x256xf32>
    %c0_16 = arith.constant 0 : index
    %c0_17 = arith.constant 0 : index
    %c0_18 = arith.constant 0 : index
    %31 = vector.load %arg3[%c0_16, %c0_17, %c0_18] : memref<1x16x1xf32, #tpu.memory_space<vmem>>, vector<1x16x1xf32>
    %c0_19 = arith.constant 0 : index
    %c0_20 = arith.constant 0 : index
    %c0_21 = arith.constant 0 : index
    %32 = vector.load %arg4[%c0_19, %c0_20, %c0_21] : memref<1x16x1xf32, #tpu.memory_space<vmem>>, vector<1x16x1xf32>
    %cst_22 = arith.constant dense<0.000000e+00> : vector<2x16xf32>
    %33 = vector.multi_reduction <add>, %30, %cst_22 [2] : vector<2x16x256xf32> to vector<2x16xf32>
    %34 = vector.shape_cast %33 : vector<2x16xf32> to vector<2x16x1xf32>
    %cst_23 = arith.constant 2.560000e+02 : f32
    %35 = vector.broadcast %cst_23 : f32 to vector<2x16x1xf32>
    %36 = arith.divf %34, %35 : vector<2x16x1xf32>
    %cst_24 = arith.constant dense<0.000000e+00> : vector<16x1xf32>
    %37 = vector.multi_reduction <add>, %36, %cst_24 [0] : vector<2x16x1xf32> to vector<16x1xf32>
    %38 = vector.shape_cast %37 : vector<16x1xf32> to vector<1x16x1xf32>
    %cst_25 = arith.constant 2.000000e+00 : f32
    %39 = vector.broadcast %cst_25 : f32 to vector<1x16x1xf32>
    %40 = arith.divf %38, %39 : vector<1x16x1xf32>
    %41 = vector.broadcast %40 : vector<1x16x1xf32> to vector<2x16x256xf32>
    %42 = arith.subf %30, %41 : vector<2x16x256xf32>
    %43 = arith.mulf %42, %42 : vector<2x16x256xf32>
    %cst_26 = arith.constant dense<0.000000e+00> : vector<2x16xf32>
    %44 = vector.multi_reduction <add>, %43, %cst_26 [2] : vector<2x16x256xf32> to vector<2x16xf32>
    %45 = vector.shape_cast %44 : vector<2x16xf32> to vector<2x16x1xf32>
    %cst_27 = arith.constant 2.560000e+02 : f32
    %46 = vector.broadcast %cst_27 : f32 to vector<2x16x1xf32>
    %47 = arith.divf %45, %46 : vector<2x16x1xf32>
    %cst_28 = arith.constant dense<0.000000e+00> : vector<16x1xf32>
    %48 = vector.multi_reduction <add>, %47, %cst_28 [0] : vector<2x16x1xf32> to vector<16x1xf32>
    %49 = vector.shape_cast %48 : vector<16x1xf32> to vector<1x16x1xf32>
    %cst_29 = arith.constant 2.000000e+00 : f32
    %50 = vector.broadcast %cst_29 : f32 to vector<1x16x1xf32>
    %51 = arith.divf %49, %50 : vector<1x16x1xf32>
    %cst_30 = arith.constant 9.99999974E-6 : f32
    %52 = vector.broadcast %cst_30 : f32 to vector<1x16x1xf32>
    %53 = arith.addf %51, %52 : vector<1x16x1xf32>
    %54 = math.rsqrt %53 : vector<1x16x1xf32>
    %55 = vector.broadcast %54 : vector<1x16x1xf32> to vector<2x16x256xf32>
    %56 = arith.mulf %42, %55 : vector<2x16x256xf32>
    %57 = vector.broadcast %31 : vector<1x16x1xf32> to vector<2x16x256xf32>
    %58 = arith.mulf %56, %57 : vector<2x16x256xf32>
    %59 = vector.broadcast %32 : vector<1x16x1xf32> to vector<2x16x256xf32>
    %60 = arith.addf %58, %59 : vector<2x16x256xf32>
    %c0_31 = arith.constant 0 : index
    %c0_32 = arith.constant 0 : index
    %c0_33 = arith.constant 0 : index
    %61 = vector.load %arg5[%c0_31, %c0_32, %c0_33] : memref<2x16x256xf32, #tpu.memory_space<vmem>>, vector<2x16x256xf32>
    tpu.vector_store %arg5[%c0_31, %c0_32, %c0_33], %60 {strides = array<i32>} : memref<2x16x256xf32, #tpu.memory_space<vmem>>, vector<2x16x256xf32>,
    return
  }
}

module attributes {stable_mosaic.version = 11 : i64} {
  func.func @_conv_chain_kernel(%arg0: memref<68xf32, #tpu.memory_space<smem>>, %arg1: memref<4xf32, #tpu.memory_space<smem>>, %arg2: memref<2x16x16xf32, #tpu.memory_space<vmem>>, %arg3: memref<2x4x4xf32, #tpu.memory_space<vmem>>) attributes {dimension_semantics = [], scalar_prefetch = 0 : i64, scratch_operands = 0 : i64, tpu.core_type = #tpu.core_type<tc>} {
    %c0 = arith.constant 0 : index
    %c0_0 = arith.constant 0 : index
    %c0_1 = arith.constant 0 : index
    %0 = vector.load %arg2[%c0, %c0_0, %c0_1] : memref<2x16x16xf32, #tpu.memory_space<vmem>>, vector<2x16x16xf32>
    %cst = arith.constant 0.000000e+00 : f32
    %1 = vector.broadcast %cst : f32 to vector<2x14x14xf32>
    %c0_2 = arith.constant 0 : index
    %2 = memref.load %arg0[%c0_2] : memref<68xf32, #tpu.memory_space<smem>>
    %3 = vector.extract_strided_slice %0 {offsets = [0, 0, 0], sizes = [2, 14, 14], strides = [1, 1, 1]} : vector<2x16x16xf32> to vector<2x14x14xf32>
    %4 = vector.broadcast %2 : f32 to vector<2x14x14xf32>
    %5 = arith.mulf %4, %3 : vector<2x14x14xf32>
    %6 = arith.addf %1, %5 : vector<2x14x14xf32>
    %c1 = arith.constant 1 : index
    %7 = memref.load %arg0[%c1] : memref<68xf32, #tpu.memory_space<smem>>
    %8 = vector.extract_strided_slice %0 {offsets = [0, 0, 1], sizes = [2, 14, 14], strides = [1, 1, 1]} : vector<2x16x16xf32> to vector<2x14x14xf32>
    %9 = vector.broadcast %7 : f32 to vector<2x14x14xf32>
    %10 = arith.mulf %9, %8 : vector<2x14x14xf32>
    %11 = arith.addf %6, %10 : vector<2x14x14xf32>
    %c2 = arith.constant 2 : index
    %12 = memref.load %arg0[%c2] : memref<68xf32, #tpu.memory_space<smem>>
    %13 = vector.extract_strided_slice %0 {offsets = [0, 0, 2], sizes = [2, 14, 14], strides = [1, 1, 1]} : vector<2x16x16xf32> to vector<2x14x14xf32>
    %14 = vector.broadcast %12 : f32 to vector<2x14x14xf32>
    %15 = arith.mulf %14, %13 : vector<2x14x14xf32>
    %16 = arith.addf %11, %15 : vector<2x14x14xf32>
    %c3 = arith.constant 3 : index
    %17 = memref.load %arg0[%c3] : memref<68xf32, #tpu.memory_space<smem>>
    %18 = vector.extract_strided_slice %0 {offsets = [0, 1, 0], sizes = [2, 14, 14], strides = [1, 1, 1]} : vector<2x16x16xf32> to vector<2x14x14xf32>
    %19 = vector.broadcast %17 : f32 to vector<2x14x14xf32>
    %20 = arith.mulf %19, %18 : vector<2x14x14xf32>
    %21 = arith.addf %16, %20 : vector<2x14x14xf32>
    %c4 = arith.constant 4 : index
    %22 = memref.load %arg0[%c4] : memref<68xf32, #tpu.memory_space<smem>>
    %23 = vector.extract_strided_slice %0 {offsets = [0, 1, 1], sizes = [2, 14, 14], strides = [1, 1, 1]} : vector<2x16x16xf32> to vector<2x14x14xf32>
    %24 = vector.broadcast %22 : f32 to vector<2x14x14xf32>
    %25 = arith.mulf %24, %23 : vector<2x14x14xf32>
    %26 = arith.addf %21, %25 : vector<2x14x14xf32>
    %c5 = arith.constant 5 : index
    %27 = memref.load %arg0[%c5] : memref<68xf32, #tpu.memory_space<smem>>
    %28 = vector.extract_strided_slice %0 {offsets = [0, 1, 2], sizes = [2, 14, 14], strides = [1, 1, 1]} : vector<2x16x16xf32> to vector<2x14x14xf32>
    %29 = vector.broadcast %27 : f32 to vector<2x14x14xf32>
    %30 = arith.mulf %29, %28 : vector<2x14x14xf32>
    %31 = arith.addf %26, %30 : vector<2x14x14xf32>
    %c6 = arith.constant 6 : index
    %32 = memref.load %arg0[%c6] : memref<68xf32, #tpu.memory_space<smem>>
    %33 = vector.extract_strided_slice %0 {offsets = [0, 2, 0], sizes = [2, 14, 14], strides = [1, 1, 1]} : vector<2x16x16xf32> to vector<2x14x14xf32>
    %34 = vector.broadcast %32 : f32 to vector<2x14x14xf32>
    %35 = arith.mulf %34, %33 : vector<2x14x14xf32>
    %36 = arith.addf %31, %35 : vector<2x14x14xf32>
    %c7 = arith.constant 7 : index
    %37 = memref.load %arg0[%c7] : memref<68xf32, #tpu.memory_space<smem>>
    %38 = vector.extract_strided_slice %0 {offsets = [0, 2, 1], sizes = [2, 14, 14], strides = [1, 1, 1]} : vector<2x16x16xf32> to vector<2x14x14xf32>
    %39 = vector.broadcast %37 : f32 to vector<2x14x14xf32>
    %40 = arith.mulf %39, %38 : vector<2x14x14xf32>
    %41 = arith.addf %36, %40 : vector<2x14x14xf32>
    %c8 = arith.constant 8 : index
    %42 = memref.load %arg0[%c8] : memref<68xf32, #tpu.memory_space<smem>>
    %43 = vector.extract_strided_slice %0 {offsets = [0, 2, 2], sizes = [2, 14, 14], strides = [1, 1, 1]} : vector<2x16x16xf32> to vector<2x14x14xf32>
    %44 = vector.broadcast %42 : f32 to vector<2x14x14xf32>
    %45 = arith.mulf %44, %43 : vector<2x14x14xf32>
    %46 = arith.addf %41, %45 : vector<2x14x14xf32>
    %c0_3 = arith.constant 0 : index
    %47 = memref.load %arg1[%c0_3] : memref<4xf32, #tpu.memory_space<smem>>
    %48 = vector.broadcast %47 : f32 to vector<2x14x14xf32>
    %49 = arith.addf %46, %48 : vector<2x14x14xf32>
    %cst_4 = arith.constant 0.000000e+00 : f32
    %50 = vector.broadcast %cst_4 : f32 to vector<2x10x10xf32>
    %c9 = arith.constant 9 : index
    %51 = memref.load %arg0[%c9] : memref<68xf32, #tpu.memory_space<smem>>
    %52 = vector.extract_strided_slice %49 {offsets = [0, 0, 0], sizes = [2, 10, 10], strides = [1, 1, 1]} : vector<2x14x14xf32> to vector<2x10x10xf32>
    %53 = vector.broadcast %51 : f32 to vector<2x10x10xf32>
    %54 = arith.mulf %53, %52 : vector<2x10x10xf32>
    %55 = arith.addf %50, %54 : vector<2x10x10xf32>
    %c10 = arith.constant 10 : index
    %56 = memref.load %arg0[%c10] : memref<68xf32, #tpu.memory_space<smem>>
    %57 = vector.extract_strided_slice %49 {offsets = [0, 0, 1], sizes = [2, 10, 10], strides = [1, 1, 1]} : vector<2x14x14xf32> to vector<2x10x10xf32>
    %58 = vector.broadcast %56 : f32 to vector<2x10x10xf32>
    %59 = arith.mulf %58, %57 : vector<2x10x10xf32>
    %60 = arith.addf %55, %59 : vector<2x10x10xf32>
    %c11 = arith.constant 11 : index
    %61 = memref.load %arg0[%c11] : memref<68xf32, #tpu.memory_space<smem>>
    %62 = vector.extract_strided_slice %49 {offsets = [0, 0, 2], sizes = [2, 10, 10], strides = [1, 1, 1]} : vector<2x14x14xf32> to vector<2x10x10xf32>
    %63 = vector.broadcast %61 : f32 to vector<2x10x10xf32>
    %64 = arith.mulf %63, %62 : vector<2x10x10xf32>
    %65 = arith.addf %60, %64 : vector<2x10x10xf32>
    %c12 = arith.constant 12 : index
    %66 = memref.load %arg0[%c12] : memref<68xf32, #tpu.memory_space<smem>>
    %67 = vector.extract_strided_slice %49 {offsets = [0, 0, 3], sizes = [2, 10, 10], strides = [1, 1, 1]} : vector<2x14x14xf32> to vector<2x10x10xf32>
    %68 = vector.broadcast %66 : f32 to vector<2x10x10xf32>
    %69 = arith.mulf %68, %67 : vector<2x10x10xf32>
    %70 = arith.addf %65, %69 : vector<2x10x10xf32>
    %c13 = arith.constant 13 : index
    %71 = memref.load %arg0[%c13] : memref<68xf32, #tpu.memory_space<smem>>
    %72 = vector.extract_strided_slice %49 {offsets = [0, 0, 4], sizes = [2, 10, 10], strides = [1, 1, 1]} : vector<2x14x14xf32> to vector<2x10x10xf32>
    %73 = vector.broadcast %71 : f32 to vector<2x10x10xf32>
    %74 = arith.mulf %73, %72 : vector<2x10x10xf32>
    %75 = arith.addf %70, %74 : vector<2x10x10xf32>
    %c14 = arith.constant 14 : index
    %76 = memref.load %arg0[%c14] : memref<68xf32, #tpu.memory_space<smem>>
    %77 = vector.extract_strided_slice %49 {offsets = [0, 1, 0], sizes = [2, 10, 10], strides = [1, 1, 1]} : vector<2x14x14xf32> to vector<2x10x10xf32>
    %78 = vector.broadcast %76 : f32 to vector<2x10x10xf32>
    %79 = arith.mulf %78, %77 : vector<2x10x10xf32>
    %80 = arith.addf %75, %79 : vector<2x10x10xf32>
    %c15 = arith.constant 15 : index
    %81 = memref.load %arg0[%c15] : memref<68xf32, #tpu.memory_space<smem>>
    %82 = vector.extract_strided_slice %49 {offsets = [0, 1, 1], sizes = [2, 10, 10], strides = [1, 1, 1]} : vector<2x14x14xf32> to vector<2x10x10xf32>
    %83 = vector.broadcast %81 : f32 to vector<2x10x10xf32>
    %84 = arith.mulf %83, %82 : vector<2x10x10xf32>
    %85 = arith.addf %80, %84 : vector<2x10x10xf32>
    %c16 = arith.constant 16 : index
    %86 = memref.load %arg0[%c16] : memref<68xf32, #tpu.memory_space<smem>>
    %87 = vector.extract_strided_slice %49 {offsets = [0, 1, 2], sizes = [2, 10, 10], strides = [1, 1, 1]} : vector<2x14x14xf32> to vector<2x10x10xf32>
    %88 = vector.broadcast %86 : f32 to vector<2x10x10xf32>
    %89 = arith.mulf %88, %87 : vector<2x10x10xf32>
    %90 = arith.addf %85, %89 : vector<2x10x10xf32>
    %c17 = arith.constant 17 : index
    %91 = memref.load %arg0[%c17] : memref<68xf32, #tpu.memory_space<smem>>
    %92 = vector.extract_strided_slice %49 {offsets = [0, 1, 3], sizes = [2, 10, 10], strides = [1, 1, 1]} : vector<2x14x14xf32> to vector<2x10x10xf32>
    %93 = vector.broadcast %91 : f32 to vector<2x10x10xf32>
    %94 = arith.mulf %93, %92 : vector<2x10x10xf32>
    %95 = arith.addf %90, %94 : vector<2x10x10xf32>
    %c18 = arith.constant 18 : index
    %96 = memref.load %arg0[%c18] : memref<68xf32, #tpu.memory_space<smem>>
    %97 = vector.extract_strided_slice %49 {offsets = [0, 1, 4], sizes = [2, 10, 10], strides = [1, 1, 1]} : vector<2x14x14xf32> to vector<2x10x10xf32>
    %98 = vector.broadcast %96 : f32 to vector<2x10x10xf32>
    %99 = arith.mulf %98, %97 : vector<2x10x10xf32>
    %100 = arith.addf %95, %99 : vector<2x10x10xf32>
    %c19 = arith.constant 19 : index
    %101 = memref.load %arg0[%c19] : memref<68xf32, #tpu.memory_space<smem>>
    %102 = vector.extract_strided_slice %49 {offsets = [0, 2, 0], sizes = [2, 10, 10], strides = [1, 1, 1]} : vector<2x14x14xf32> to vector<2x10x10xf32>
    %103 = vector.broadcast %101 : f32 to vector<2x10x10xf32>
    %104 = arith.mulf %103, %102 : vector<2x10x10xf32>
    %105 = arith.addf %100, %104 : vector<2x10x10xf32>
    %c20 = arith.constant 20 : index
    %106 = memref.load %arg0[%c20] : memref<68xf32, #tpu.memory_space<smem>>
    %107 = vector.extract_strided_slice %49 {offsets = [0, 2, 1], sizes = [2, 10, 10], strides = [1, 1, 1]} : vector<2x14x14xf32> to vector<2x10x10xf32>
    %108 = vector.broadcast %106 : f32 to vector<2x10x10xf32>
    %109 = arith.mulf %108, %107 : vector<2x10x10xf32>
    %110 = arith.addf %105, %109 : vector<2x10x10xf32>
    %c21 = arith.constant 21 : index
    %111 = memref.load %arg0[%c21] : memref<68xf32, #tpu.memory_space<smem>>
    %112 = vector.extract_strided_slice %49 {offsets = [0, 2, 2], sizes = [2, 10, 10], strides = [1, 1, 1]} : vector<2x14x14xf32> to vector<2x10x10xf32>
    %113 = vector.broadcast %111 : f32 to vector<2x10x10xf32>
    %114 = arith.mulf %113, %112 : vector<2x10x10xf32>
    %115 = arith.addf %110, %114 : vector<2x10x10xf32>
    %c22 = arith.constant 22 : index
    %116 = memref.load %arg0[%c22] : memref<68xf32, #tpu.memory_space<smem>>
    %117 = vector.extract_strided_slice %49 {offsets = [0, 2, 3], sizes = [2, 10, 10], strides = [1, 1, 1]} : vector<2x14x14xf32> to vector<2x10x10xf32>
    %118 = vector.broadcast %116 : f32 to vector<2x10x10xf32>
    %119 = arith.mulf %118, %117 : vector<2x10x10xf32>
    %120 = arith.addf %115, %119 : vector<2x10x10xf32>
    %c23 = arith.constant 23 : index
    %121 = memref.load %arg0[%c23] : memref<68xf32, #tpu.memory_space<smem>>
    %122 = vector.extract_strided_slice %49 {offsets = [0, 2, 4], sizes = [2, 10, 10], strides = [1, 1, 1]} : vector<2x14x14xf32> to vector<2x10x10xf32>
    %123 = vector.broadcast %121 : f32 to vector<2x10x10xf32>
    %124 = arith.mulf %123, %122 : vector<2x10x10xf32>
    %125 = arith.addf %120, %124 : vector<2x10x10xf32>
    %c24 = arith.constant 24 : index
    %126 = memref.load %arg0[%c24] : memref<68xf32, #tpu.memory_space<smem>>
    %127 = vector.extract_strided_slice %49 {offsets = [0, 3, 0], sizes = [2, 10, 10], strides = [1, 1, 1]} : vector<2x14x14xf32> to vector<2x10x10xf32>
    %128 = vector.broadcast %126 : f32 to vector<2x10x10xf32>
    %129 = arith.mulf %128, %127 : vector<2x10x10xf32>
    %130 = arith.addf %125, %129 : vector<2x10x10xf32>
    %c25 = arith.constant 25 : index
    %131 = memref.load %arg0[%c25] : memref<68xf32, #tpu.memory_space<smem>>
    %132 = vector.extract_strided_slice %49 {offsets = [0, 3, 1], sizes = [2, 10, 10], strides = [1, 1, 1]} : vector<2x14x14xf32> to vector<2x10x10xf32>
    %133 = vector.broadcast %131 : f32 to vector<2x10x10xf32>
    %134 = arith.mulf %133, %132 : vector<2x10x10xf32>
    %135 = arith.addf %130, %134 : vector<2x10x10xf32>
    %c26 = arith.constant 26 : index
    %136 = memref.load %arg0[%c26] : memref<68xf32, #tpu.memory_space<smem>>
    %137 = vector.extract_strided_slice %49 {offsets = [0, 3, 2], sizes = [2, 10, 10], strides = [1, 1, 1]} : vector<2x14x14xf32> to vector<2x10x10xf32>
    %138 = vector.broadcast %136 : f32 to vector<2x10x10xf32>
    %139 = arith.mulf %138, %137 : vector<2x10x10xf32>
    %140 = arith.addf %135, %139 : vector<2x10x10xf32>
    %c27 = arith.constant 27 : index
    %141 = memref.load %arg0[%c27] : memref<68xf32, #tpu.memory_space<smem>>
    %142 = vector.extract_strided_slice %49 {offsets = [0, 3, 3], sizes = [2, 10, 10], strides = [1, 1, 1]} : vector<2x14x14xf32> to vector<2x10x10xf32>
    %143 = vector.broadcast %141 : f32 to vector<2x10x10xf32>
    %144 = arith.mulf %143, %142 : vector<2x10x10xf32>
    %145 = arith.addf %140, %144 : vector<2x10x10xf32>
    %c28 = arith.constant 28 : index
    %146 = memref.load %arg0[%c28] : memref<68xf32, #tpu.memory_space<smem>>
    %147 = vector.extract_strided_slice %49 {offsets = [0, 3, 4], sizes = [2, 10, 10], strides = [1, 1, 1]} : vector<2x14x14xf32> to vector<2x10x10xf32>
    %148 = vector.broadcast %146 : f32 to vector<2x10x10xf32>
    %149 = arith.mulf %148, %147 : vector<2x10x10xf32>
    %150 = arith.addf %145, %149 : vector<2x10x10xf32>
    %c29 = arith.constant 29 : index
    %151 = memref.load %arg0[%c29] : memref<68xf32, #tpu.memory_space<smem>>
    %152 = vector.extract_strided_slice %49 {offsets = [0, 4, 0], sizes = [2, 10, 10], strides = [1, 1, 1]} : vector<2x14x14xf32> to vector<2x10x10xf32>
    %153 = vector.broadcast %151 : f32 to vector<2x10x10xf32>
    %154 = arith.mulf %153, %152 : vector<2x10x10xf32>
    %155 = arith.addf %150, %154 : vector<2x10x10xf32>
    %c30 = arith.constant 30 : index
    %156 = memref.load %arg0[%c30] : memref<68xf32, #tpu.memory_space<smem>>
    %157 = vector.extract_strided_slice %49 {offsets = [0, 4, 1], sizes = [2, 10, 10], strides = [1, 1, 1]} : vector<2x14x14xf32> to vector<2x10x10xf32>
    %158 = vector.broadcast %156 : f32 to vector<2x10x10xf32>
    %159 = arith.mulf %158, %157 : vector<2x10x10xf32>
    %160 = arith.addf %155, %159 : vector<2x10x10xf32>
    %c31 = arith.constant 31 : index
    %161 = memref.load %arg0[%c31] : memref<68xf32, #tpu.memory_space<smem>>
    %162 = vector.extract_strided_slice %49 {offsets = [0, 4, 2], sizes = [2, 10, 10], strides = [1, 1, 1]} : vector<2x14x14xf32> to vector<2x10x10xf32>
    %163 = vector.broadcast %161 : f32 to vector<2x10x10xf32>
    %164 = arith.mulf %163, %162 : vector<2x10x10xf32>
    %165 = arith.addf %160, %164 : vector<2x10x10xf32>
    %c32 = arith.constant 32 : index
    %166 = memref.load %arg0[%c32] : memref<68xf32, #tpu.memory_space<smem>>
    %167 = vector.extract_strided_slice %49 {offsets = [0, 4, 3], sizes = [2, 10, 10], strides = [1, 1, 1]} : vector<2x14x14xf32> to vector<2x10x10xf32>
    %168 = vector.broadcast %166 : f32 to vector<2x10x10xf32>
    %169 = arith.mulf %168, %167 : vector<2x10x10xf32>
    %170 = arith.addf %165, %169 : vector<2x10x10xf32>
    %c33 = arith.constant 33 : index
    %171 = memref.load %arg0[%c33] : memref<68xf32, #tpu.memory_space<smem>>
    %172 = vector.extract_strided_slice %49 {offsets = [0, 4, 4], sizes = [2, 10, 10], strides = [1, 1, 1]} : vector<2x14x14xf32> to vector<2x10x10xf32>
    %173 = vector.broadcast %171 : f32 to vector<2x10x10xf32>
    %174 = arith.mulf %173, %172 : vector<2x10x10xf32>
    %175 = arith.addf %170, %174 : vector<2x10x10xf32>
    %c1_5 = arith.constant 1 : index
    %176 = memref.load %arg1[%c1_5] : memref<4xf32, #tpu.memory_space<smem>>
    %177 = vector.broadcast %176 : f32 to vector<2x10x10xf32>
    %178 = arith.addf %175, %177 : vector<2x10x10xf32>
    %cst_6 = arith.constant 0.000000e+00 : f32
    %179 = vector.broadcast %cst_6 : f32 to vector<2x6x6xf32>
    %c34 = arith.constant 34 : index
    %180 = memref.load %arg0[%c34] : memref<68xf32, #tpu.memory_space<smem>>
    %181 = vector.extract_strided_slice %178 {offsets = [0, 0, 0], sizes = [2, 6, 6], strides = [1, 1, 1]} : vector<2x10x10xf32> to vector<2x6x6xf32>
    %182 = vector.broadcast %180 : f32 to vector<2x6x6xf32>
    %183 = arith.mulf %182, %181 : vector<2x6x6xf32>
    %184 = arith.addf %179, %183 : vector<2x6x6xf32>
    %c35 = arith.constant 35 : index
    %185 = memref.load %arg0[%c35] : memref<68xf32, #tpu.memory_space<smem>>
    %186 = vector.extract_strided_slice %178 {offsets = [0, 0, 1], sizes = [2, 6, 6], strides = [1, 1, 1]} : vector<2x10x10xf32> to vector<2x6x6xf32>
    %187 = vector.broadcast %185 : f32 to vector<2x6x6xf32>
    %188 = arith.mulf %187, %186 : vector<2x6x6xf32>
    %189 = arith.addf %184, %188 : vector<2x6x6xf32>
    %c36 = arith.constant 36 : index
    %190 = memref.load %arg0[%c36] : memref<68xf32, #tpu.memory_space<smem>>
    %191 = vector.extract_strided_slice %178 {offsets = [0, 0, 2], sizes = [2, 6, 6], strides = [1, 1, 1]} : vector<2x10x10xf32> to vector<2x6x6xf32>
    %192 = vector.broadcast %190 : f32 to vector<2x6x6xf32>
    %193 = arith.mulf %192, %191 : vector<2x6x6xf32>
    %194 = arith.addf %189, %193 : vector<2x6x6xf32>
    %c37 = arith.constant 37 : index
    %195 = memref.load %arg0[%c37] : memref<68xf32, #tpu.memory_space<smem>>
    %196 = vector.extract_strided_slice %178 {offsets = [0, 0, 3], sizes = [2, 6, 6], strides = [1, 1, 1]} : vector<2x10x10xf32> to vector<2x6x6xf32>
    %197 = vector.broadcast %195 : f32 to vector<2x6x6xf32>
    %198 = arith.mulf %197, %196 : vector<2x6x6xf32>
    %199 = arith.addf %194, %198 : vector<2x6x6xf32>
    %c38 = arith.constant 38 : index
    %200 = memref.load %arg0[%c38] : memref<68xf32, #tpu.memory_space<smem>>
    %201 = vector.extract_strided_slice %178 {offsets = [0, 0, 4], sizes = [2, 6, 6], strides = [1, 1, 1]} : vector<2x10x10xf32> to vector<2x6x6xf32>
    %202 = vector.broadcast %200 : f32 to vector<2x6x6xf32>
    %203 = arith.mulf %202, %201 : vector<2x6x6xf32>
    %204 = arith.addf %199, %203 : vector<2x6x6xf32>
    %c39 = arith.constant 39 : index
    %205 = memref.load %arg0[%c39] : memref<68xf32, #tpu.memory_space<smem>>
    %206 = vector.extract_strided_slice %178 {offsets = [0, 1, 0], sizes = [2, 6, 6], strides = [1, 1, 1]} : vector<2x10x10xf32> to vector<2x6x6xf32>
    %207 = vector.broadcast %205 : f32 to vector<2x6x6xf32>
    %208 = arith.mulf %207, %206 : vector<2x6x6xf32>
    %209 = arith.addf %204, %208 : vector<2x6x6xf32>
    %c40 = arith.constant 40 : index
    %210 = memref.load %arg0[%c40] : memref<68xf32, #tpu.memory_space<smem>>
    %211 = vector.extract_strided_slice %178 {offsets = [0, 1, 1], sizes = [2, 6, 6], strides = [1, 1, 1]} : vector<2x10x10xf32> to vector<2x6x6xf32>
    %212 = vector.broadcast %210 : f32 to vector<2x6x6xf32>
    %213 = arith.mulf %212, %211 : vector<2x6x6xf32>
    %214 = arith.addf %209, %213 : vector<2x6x6xf32>
    %c41 = arith.constant 41 : index
    %215 = memref.load %arg0[%c41] : memref<68xf32, #tpu.memory_space<smem>>
    %216 = vector.extract_strided_slice %178 {offsets = [0, 1, 2], sizes = [2, 6, 6], strides = [1, 1, 1]} : vector<2x10x10xf32> to vector<2x6x6xf32>
    %217 = vector.broadcast %215 : f32 to vector<2x6x6xf32>
    %218 = arith.mulf %217, %216 : vector<2x6x6xf32>
    %219 = arith.addf %214, %218 : vector<2x6x6xf32>
    %c42 = arith.constant 42 : index
    %220 = memref.load %arg0[%c42] : memref<68xf32, #tpu.memory_space<smem>>
    %221 = vector.extract_strided_slice %178 {offsets = [0, 1, 3], sizes = [2, 6, 6], strides = [1, 1, 1]} : vector<2x10x10xf32> to vector<2x6x6xf32>
    %222 = vector.broadcast %220 : f32 to vector<2x6x6xf32>
    %223 = arith.mulf %222, %221 : vector<2x6x6xf32>
    %224 = arith.addf %219, %223 : vector<2x6x6xf32>
    %c43 = arith.constant 43 : index
    %225 = memref.load %arg0[%c43] : memref<68xf32, #tpu.memory_space<smem>>
    %226 = vector.extract_strided_slice %178 {offsets = [0, 1, 4], sizes = [2, 6, 6], strides = [1, 1, 1]} : vector<2x10x10xf32> to vector<2x6x6xf32>
    %227 = vector.broadcast %225 : f32 to vector<2x6x6xf32>
    %228 = arith.mulf %227, %226 : vector<2x6x6xf32>
    %229 = arith.addf %224, %228 : vector<2x6x6xf32>
    %c44 = arith.constant 44 : index
    %230 = memref.load %arg0[%c44] : memref<68xf32, #tpu.memory_space<smem>>
    %231 = vector.extract_strided_slice %178 {offsets = [0, 2, 0], sizes = [2, 6, 6], strides = [1, 1, 1]} : vector<2x10x10xf32> to vector<2x6x6xf32>
    %232 = vector.broadcast %230 : f32 to vector<2x6x6xf32>
    %233 = arith.mulf %232, %231 : vector<2x6x6xf32>
    %234 = arith.addf %229, %233 : vector<2x6x6xf32>
    %c45 = arith.constant 45 : index
    %235 = memref.load %arg0[%c45] : memref<68xf32, #tpu.memory_space<smem>>
    %236 = vector.extract_strided_slice %178 {offsets = [0, 2, 1], sizes = [2, 6, 6], strides = [1, 1, 1]} : vector<2x10x10xf32> to vector<2x6x6xf32>
    %237 = vector.broadcast %235 : f32 to vector<2x6x6xf32>
    %238 = arith.mulf %237, %236 : vector<2x6x6xf32>
    %239 = arith.addf %234, %238 : vector<2x6x6xf32>
    %c46 = arith.constant 46 : index
    %240 = memref.load %arg0[%c46] : memref<68xf32, #tpu.memory_space<smem>>
    %241 = vector.extract_strided_slice %178 {offsets = [0, 2, 2], sizes = [2, 6, 6], strides = [1, 1, 1]} : vector<2x10x10xf32> to vector<2x6x6xf32>
    %242 = vector.broadcast %240 : f32 to vector<2x6x6xf32>
    %243 = arith.mulf %242, %241 : vector<2x6x6xf32>
    %244 = arith.addf %239, %243 : vector<2x6x6xf32>
    %c47 = arith.constant 47 : index
    %245 = memref.load %arg0[%c47] : memref<68xf32, #tpu.memory_space<smem>>
    %246 = vector.extract_strided_slice %178 {offsets = [0, 2, 3], sizes = [2, 6, 6], strides = [1, 1, 1]} : vector<2x10x10xf32> to vector<2x6x6xf32>
    %247 = vector.broadcast %245 : f32 to vector<2x6x6xf32>
    %248 = arith.mulf %247, %246 : vector<2x6x6xf32>
    %249 = arith.addf %244, %248 : vector<2x6x6xf32>
    %c48 = arith.constant 48 : index
    %250 = memref.load %arg0[%c48] : memref<68xf32, #tpu.memory_space<smem>>
    %251 = vector.extract_strided_slice %178 {offsets = [0, 2, 4], sizes = [2, 6, 6], strides = [1, 1, 1]} : vector<2x10x10xf32> to vector<2x6x6xf32>
    %252 = vector.broadcast %250 : f32 to vector<2x6x6xf32>
    %253 = arith.mulf %252, %251 : vector<2x6x6xf32>
    %254 = arith.addf %249, %253 : vector<2x6x6xf32>
    %c49 = arith.constant 49 : index
    %255 = memref.load %arg0[%c49] : memref<68xf32, #tpu.memory_space<smem>>
    %256 = vector.extract_strided_slice %178 {offsets = [0, 3, 0], sizes = [2, 6, 6], strides = [1, 1, 1]} : vector<2x10x10xf32> to vector<2x6x6xf32>
    %257 = vector.broadcast %255 : f32 to vector<2x6x6xf32>
    %258 = arith.mulf %257, %256 : vector<2x6x6xf32>
    %259 = arith.addf %254, %258 : vector<2x6x6xf32>
    %c50 = arith.constant 50 : index
    %260 = memref.load %arg0[%c50] : memref<68xf32, #tpu.memory_space<smem>>
    %261 = vector.extract_strided_slice %178 {offsets = [0, 3, 1], sizes = [2, 6, 6], strides = [1, 1, 1]} : vector<2x10x10xf32> to vector<2x6x6xf32>
    %262 = vector.broadcast %260 : f32 to vector<2x6x6xf32>
    %263 = arith.mulf %262, %261 : vector<2x6x6xf32>
    %264 = arith.addf %259, %263 : vector<2x6x6xf32>
    %c51 = arith.constant 51 : index
    %265 = memref.load %arg0[%c51] : memref<68xf32, #tpu.memory_space<smem>>
    %266 = vector.extract_strided_slice %178 {offsets = [0, 3, 2], sizes = [2, 6, 6], strides = [1, 1, 1]} : vector<2x10x10xf32> to vector<2x6x6xf32>
    %267 = vector.broadcast %265 : f32 to vector<2x6x6xf32>
    %268 = arith.mulf %267, %266 : vector<2x6x6xf32>
    %269 = arith.addf %264, %268 : vector<2x6x6xf32>
    %c52 = arith.constant 52 : index
    %270 = memref.load %arg0[%c52] : memref<68xf32, #tpu.memory_space<smem>>
    %271 = vector.extract_strided_slice %178 {offsets = [0, 3, 3], sizes = [2, 6, 6], strides = [1, 1, 1]} : vector<2x10x10xf32> to vector<2x6x6xf32>
    %272 = vector.broadcast %270 : f32 to vector<2x6x6xf32>
    %273 = arith.mulf %272, %271 : vector<2x6x6xf32>
    %274 = arith.addf %269, %273 : vector<2x6x6xf32>
    %c53 = arith.constant 53 : index
    %275 = memref.load %arg0[%c53] : memref<68xf32, #tpu.memory_space<smem>>
    %276 = vector.extract_strided_slice %178 {offsets = [0, 3, 4], sizes = [2, 6, 6], strides = [1, 1, 1]} : vector<2x10x10xf32> to vector<2x6x6xf32>
    %277 = vector.broadcast %275 : f32 to vector<2x6x6xf32>
    %278 = arith.mulf %277, %276 : vector<2x6x6xf32>
    %279 = arith.addf %274, %278 : vector<2x6x6xf32>
    %c54 = arith.constant 54 : index
    %280 = memref.load %arg0[%c54] : memref<68xf32, #tpu.memory_space<smem>>
    %281 = vector.extract_strided_slice %178 {offsets = [0, 4, 0], sizes = [2, 6, 6], strides = [1, 1, 1]} : vector<2x10x10xf32> to vector<2x6x6xf32>
    %282 = vector.broadcast %280 : f32 to vector<2x6x6xf32>
    %283 = arith.mulf %282, %281 : vector<2x6x6xf32>
    %284 = arith.addf %279, %283 : vector<2x6x6xf32>
    %c55 = arith.constant 55 : index
    %285 = memref.load %arg0[%c55] : memref<68xf32, #tpu.memory_space<smem>>
    %286 = vector.extract_strided_slice %178 {offsets = [0, 4, 1], sizes = [2, 6, 6], strides = [1, 1, 1]} : vector<2x10x10xf32> to vector<2x6x6xf32>
    %287 = vector.broadcast %285 : f32 to vector<2x6x6xf32>
    %288 = arith.mulf %287, %286 : vector<2x6x6xf32>
    %289 = arith.addf %284, %288 : vector<2x6x6xf32>
    %c56 = arith.constant 56 : index
    %290 = memref.load %arg0[%c56] : memref<68xf32, #tpu.memory_space<smem>>
    %291 = vector.extract_strided_slice %178 {offsets = [0, 4, 2], sizes = [2, 6, 6], strides = [1, 1, 1]} : vector<2x10x10xf32> to vector<2x6x6xf32>
    %292 = vector.broadcast %290 : f32 to vector<2x6x6xf32>
    %293 = arith.mulf %292, %291 : vector<2x6x6xf32>
    %294 = arith.addf %289, %293 : vector<2x6x6xf32>
    %c57 = arith.constant 57 : index
    %295 = memref.load %arg0[%c57] : memref<68xf32, #tpu.memory_space<smem>>
    %296 = vector.extract_strided_slice %178 {offsets = [0, 4, 3], sizes = [2, 6, 6], strides = [1, 1, 1]} : vector<2x10x10xf32> to vector<2x6x6xf32>
    %297 = vector.broadcast %295 : f32 to vector<2x6x6xf32>
    %298 = arith.mulf %297, %296 : vector<2x6x6xf32>
    %299 = arith.addf %294, %298 : vector<2x6x6xf32>
    %c58 = arith.constant 58 : index
    %300 = memref.load %arg0[%c58] : memref<68xf32, #tpu.memory_space<smem>>
    %301 = vector.extract_strided_slice %178 {offsets = [0, 4, 4], sizes = [2, 6, 6], strides = [1, 1, 1]} : vector<2x10x10xf32> to vector<2x6x6xf32>
    %302 = vector.broadcast %300 : f32 to vector<2x6x6xf32>
    %303 = arith.mulf %302, %301 : vector<2x6x6xf32>
    %304 = arith.addf %299, %303 : vector<2x6x6xf32>
    %c2_7 = arith.constant 2 : index
    %305 = memref.load %arg1[%c2_7] : memref<4xf32, #tpu.memory_space<smem>>
    %306 = vector.broadcast %305 : f32 to vector<2x6x6xf32>
    %307 = arith.addf %304, %306 : vector<2x6x6xf32>
    %cst_8 = arith.constant 0.000000e+00 : f32
    %308 = vector.broadcast %cst_8 : f32 to vector<2x4x4xf32>
    %c59 = arith.constant 59 : index
    %309 = memref.load %arg0[%c59] : memref<68xf32, #tpu.memory_space<smem>>
    %310 = vector.extract_strided_slice %307 {offsets = [0, 0, 0], sizes = [2, 4, 4], strides = [1, 1, 1]} : vector<2x6x6xf32> to vector<2x4x4xf32>
    %311 = vector.broadcast %309 : f32 to vector<2x4x4xf32>
    %312 = arith.mulf %311, %310 : vector<2x4x4xf32>
    %313 = arith.addf %308, %312 : vector<2x4x4xf32>
    %c60 = arith.constant 60 : index
    %314 = memref.load %arg0[%c60] : memref<68xf32, #tpu.memory_space<smem>>
    %315 = vector.extract_strided_slice %307 {offsets = [0, 0, 1], sizes = [2, 4, 4], strides = [1, 1, 1]} : vector<2x6x6xf32> to vector<2x4x4xf32>
    %316 = vector.broadcast %314 : f32 to vector<2x4x4xf32>
    %317 = arith.mulf %316, %315 : vector<2x4x4xf32>
    %318 = arith.addf %313, %317 : vector<2x4x4xf32>
    %c61 = arith.constant 61 : index
    %319 = memref.load %arg0[%c61] : memref<68xf32, #tpu.memory_space<smem>>
    %320 = vector.extract_strided_slice %307 {offsets = [0, 0, 2], sizes = [2, 4, 4], strides = [1, 1, 1]} : vector<2x6x6xf32> to vector<2x4x4xf32>
    %321 = vector.broadcast %319 : f32 to vector<2x4x4xf32>
    %322 = arith.mulf %321, %320 : vector<2x4x4xf32>
    %323 = arith.addf %318, %322 : vector<2x4x4xf32>
    %c62 = arith.constant 62 : index
    %324 = memref.load %arg0[%c62] : memref<68xf32, #tpu.memory_space<smem>>
    %325 = vector.extract_strided_slice %307 {offsets = [0, 1, 0], sizes = [2, 4, 4], strides = [1, 1, 1]} : vector<2x6x6xf32> to vector<2x4x4xf32>
    %326 = vector.broadcast %324 : f32 to vector<2x4x4xf32>
    %327 = arith.mulf %326, %325 : vector<2x4x4xf32>
    %328 = arith.addf %323, %327 : vector<2x4x4xf32>
    %c63 = arith.constant 63 : index
    %329 = memref.load %arg0[%c63] : memref<68xf32, #tpu.memory_space<smem>>
    %330 = vector.extract_strided_slice %307 {offsets = [0, 1, 1], sizes = [2, 4, 4], strides = [1, 1, 1]} : vector<2x6x6xf32> to vector<2x4x4xf32>
    %331 = vector.broadcast %329 : f32 to vector<2x4x4xf32>
    %332 = arith.mulf %331, %330 : vector<2x4x4xf32>
    %333 = arith.addf %328, %332 : vector<2x4x4xf32>
    %c64 = arith.constant 64 : index
    %334 = memref.load %arg0[%c64] : memref<68xf32, #tpu.memory_space<smem>>
    %335 = vector.extract_strided_slice %307 {offsets = [0, 1, 2], sizes = [2, 4, 4], strides = [1, 1, 1]} : vector<2x6x6xf32> to vector<2x4x4xf32>
    %336 = vector.broadcast %334 : f32 to vector<2x4x4xf32>
    %337 = arith.mulf %336, %335 : vector<2x4x4xf32>
    %338 = arith.addf %333, %337 : vector<2x4x4xf32>
    %c65 = arith.constant 65 : index
    %339 = memref.load %arg0[%c65] : memref<68xf32, #tpu.memory_space<smem>>
    %340 = vector.extract_strided_slice %307 {offsets = [0, 2, 0], sizes = [2, 4, 4], strides = [1, 1, 1]} : vector<2x6x6xf32> to vector<2x4x4xf32>
    %341 = vector.broadcast %339 : f32 to vector<2x4x4xf32>
    %342 = arith.mulf %341, %340 : vector<2x4x4xf32>
    %343 = arith.addf %338, %342 : vector<2x4x4xf32>
    %c66 = arith.constant 66 : index
    %344 = memref.load %arg0[%c66] : memref<68xf32, #tpu.memory_space<smem>>
    %345 = vector.extract_strided_slice %307 {offsets = [0, 2, 1], sizes = [2, 4, 4], strides = [1, 1, 1]} : vector<2x6x6xf32> to vector<2x4x4xf32>
    %346 = vector.broadcast %344 : f32 to vector<2x4x4xf32>
    %347 = arith.mulf %346, %345 : vector<2x4x4xf32>
    %348 = arith.addf %343, %347 : vector<2x4x4xf32>
    %c67 = arith.constant 67 : index
    %349 = memref.load %arg0[%c67] : memref<68xf32, #tpu.memory_space<smem>>
    %350 = vector.extract_strided_slice %307 {offsets = [0, 2, 2], sizes = [2, 4, 4], strides = [1, 1, 1]} : vector<2x6x6xf32> to vector<2x4x4xf32>
    %351 = vector.broadcast %349 : f32 to vector<2x4x4xf32>
    %352 = arith.mulf %351, %350 : vector<2x4x4xf32>
    %353 = arith.addf %348, %352 : vector<2x4x4xf32>
    %c3_9 = arith.constant 3 : index
    %354 = memref.load %arg1[%c3_9] : memref<4xf32, #tpu.memory_space<smem>>
    %355 = vector.broadcast %354 : f32 to vector<2x4x4xf32>
    %356 = arith.addf %353, %355 : vector<2x4x4xf32>
    %c0_10 = arith.constant 0 : index
    %c0_11 = arith.constant 0 : index
    %c0_12 = arith.constant 0 : index
    %357 = vector.load %arg3[%c0_10, %c0_11, %c0_12] : memref<2x4x4xf32, #tpu.memory_space<vmem>>, vector<2x4x4xf32>
    tpu.vector_store %arg3[%c0_10, %c0_11, %c0_12], %356 {strides = array<i32>} : memref<2x4x4xf32, #tpu.memory_space<vmem>>, vector<2x4x4xf32>,
    return
  }
}

</mosaic_0001>

<bundles_post_ra>
// kernel: mock_module_forward.3
= control target key start
LH: loop header
LB: loop body
LE: loop exit
PB: predicated region body
PF: predicated region fallthrough
CT: control target
= control target key end

     0   :  { %v269_v12 = vmov 0   ;;  %s372_s0 = inlined_call_operand.vmem [shape: f32[2,16,256], index: 0, kind: input, shape index: {}]   ;;  %s373_s1 = inlined_call_operand.vmem [shape: f32[1,16,1], index: 1, kind: input, shape index: {}]   ;;  %s374_s2 = inlined_call_operand.vmem [shape: f32[1,16,1], index: 2, kind: input, shape index: {}]   ;;  %s375_s3 = inlined_call_operand.vmem [shape: f32[1,16,1], index: 3, kind: input, shape index: {}]   ;;  %s376_s4 = inlined_call_operand.vmem [shape: f32[1,16,1], index: 4, kind: input, shape index: {}]   ;;  %s377_s5 = inlined_call_operand.vmem [shape: f32[2,16,256], index: 5, kind: output, shape index: {}]  }
   0x1   :  { %v24_v0 = vld [vmem:[%s372_s0 + $0x20] sm:$0xff]  ;;  %v25_v1 = vld [vmem:[%s372_s0 + $0x28] sm:$0xff]  ;;  %v26_v5 = vld [vmem:[%s372_s0 + $0x30] sm:$0xff]  ;;  %260 = vset.pattern.permute.xlu1 %v269_v12  ;;  %259 = vset.pattern.permute.xlu0 %v269_v12 }
   0x2   :  { %v20_v2 = vld [vmem:[%s372_s0] sm:$0xff]  ;;  %v38_v3 = vadd.f32 %v25_v1, %v24_v0  ;;  %v21_v4 = vld [vmem:[%s372_s0 + $0x8] sm:$0xff]  ;;  %v27_v6 = vld [vmem:[%s372_s0 + $0x38] sm:$0xff] }
   0x3   :  { %v32_v7 = vadd.f32 %v21_v4, %v20_v2  ;;  %v22_v8 = vld [vmem:[%s372_s0 + $0x10] sm:$0xff]  ;;  %v23_v9 = vld [vmem:[%s372_s0 + $0x18] sm:$0xff]  ;;  %v41_v10 = vadd.f32 %v27_v6, %v26_v5  ;;  %v29_v40 = vld [vmem:[%s373_s1 + $0x8] sm:$0xff] }
   0x4   :  { %39 = vadd.xlane.f32.xlu1 %v38_v3  ;;  %v35_v11 = vadd.f32 %v23_v9, %v22_v8  ;;  %v30_v41 = vld [vmem:[%s374_s2] sm:$0xff]  ;;  %v31_v48 = vld [vmem:[%s374_s2 + $0x8] sm:$0xff] }
   0x5   :  { %33 = vadd.xlane.f32.xlu0 %v32_v7  ;;  %v28_v42 = vld [vmem:[%s373_s1] sm:$0xff] }
   0x8   :  { %42 = vadd.xlane.f32.xlu1 %v41_v10 }
   0x9   :  { %36 = vadd.xlane.f32.xlu0 %v35_v11 }
  0x91   :  { %v40_v13 = vpop.xlane.xlu1 %39 }
  0x92   :  { %v47_v14 = vmul.f32 0.00390625, %v40_v13  ;;  %v34_v15 = vpop.xlane.xlu0 %33 }
  0x93   :  { %v45_v16 = vmul.f32 0.00390625, %v34_v15 }
  0x95   :  { %v49_v17 = vadd.f32 %v47_v14, %v45_v16  ;;  %v43_v18 = vpop.xlane.xlu1 %42 }
  0x96   :  { %v48_v19 = vmul.f32 0.00390625, %v43_v18  ;;  %v37_v20 = vpop.xlane.xlu0 %36 }
  0x97   :  { %v52_v21 = vmul.f32 0.5, %v49_v17  ;;  %v46_v22 = vmul.f32 0.00390625, %v37_v20 }
  0x99   :  { %v50_v23 = vadd.f32 %v48_v19, %v46_v22  ;;  %v54_v24 = vsub.f32 %v20_v2, %v52_v21  ;;  %v55_v25 = vsub.f32 %v21_v4, %v52_v21  ;;  %v58_v26 = vsub.f32 %v24_v0, %v52_v21 }
  0x9a   :  { %v59_v27 = vsub.f32 %v25_v1, %v52_v21 }
  0x9b   :  { %v53_v28 = vmul.f32 0.5, %v50_v23  ;;  %v62_v29 = vmul.f32 %v54_v24, %v54_v24  ;;  %v63_v30 = vmul.f32 %v55_v25, %v55_v25  ;;  %v66_v31 = vmul.f32 %v58_v26, %v58_v26 }
  0x9c   :  { %v67_v33 = vmul.f32 %v59_v27, %v59_v27 }
  0x9d   :  { %v70_v32 = vadd.f32 %v63_v30, %v62_v29  ;;  %v56_v34 = vsub.f32 %v22_v8, %v53_v28  ;;  %v57_v35 = vsub.f32 %v23_v9, %v53_v28  ;;  %v60_v43 = vsub.f32 %v26_v5, %v53_v28 }
  0x9e   :  { %v76_v38 = vadd.f32 %v67_v33, %v66_v31  ;;  %v61_v44 = vsub.f32 %v27_v6, %v53_v28  ;;  %v139_v33 = vld [vmem:[%s375_s3 + $0x8] sm:$0xff] }
  0x9f   :  { %71 = vadd.xlane.f32.xlu0 %v70_v32  ;;  %v64_v36 = vmul.f32 %v56_v34, %v56_v34  ;;  %v65_v37 = vmul.f32 %v57_v35, %v57_v35  ;;  %v68_v45 = vmul.f32 %v60_v43, %v60_v43 }
  0xa0   :  { %v69_v46 = vmul.f32 %v61_v44, %v61_v44 }
  0xa1   :  { %v73_v39 = vadd.f32 %v65_v37, %v64_v36 }
  0xa2   :  { %v79_v47 = vadd.f32 %v69_v46, %v68_v45 }
  0xa3   :  { %77 = vadd.xlane.f32.xlu0 %v76_v38  ;;  %74 = vadd.xlane.f32.xlu1 %v73_v39 }
  0xb4   :  { %109 = vperm.xlu1 %260, %v29_v40  }
  0xb8   :  { %122 = vperm.xlu1 %260, %v30_v41  }
  0xb9   :  { %104 = vperm.xlu0 %259, %v28_v42  }
  0xdc   :  { %80 = vadd.xlane.f32.xlu1 %v79_v47 }
  0xed   :  { %127 = vperm.xlu1 %260, %v31_v48  }
 0x12c   :  { %v72_v49 = vpop.xlane.xlu0 %71 }
 0x12d   :  { %v82_v51 = vmul.f32 0.00390625, %v72_v49 }
 0x130   :  { %v78_v50 = vpop.xlane.xlu0 %77  ;;  %v75_v56 = vpop.xlane.xlu1 %74 }
 0x131   :  { %v84_v52 = vmul.f32 0.00390625, %v78_v50  ;;  %v83_v12 = vmul.f32 0.00390625, %v75_v56 }
 0x133   :  { %v86_v53 = vadd.f32 %v84_v52, %v82_v51  ;;  %v141_v51 = vld [vmem:[%s376_s4 + $0x8] sm:$0xff] }
 0x134   :  { %v110_v57 = vpop.permute.xlu1 %109 }
 0x135   :  { %v88_v54 = vmul.f32 0.5, %v86_v53 }
 0x137   :  { %v90_v55 = vadd.f32 1e-05, %v88_v54 }
 0x138   :  { %v105_v59 = vpop.permute.xlu0 %104  ;;  %v123_v4 = vpop.permute.xlu1 %122 }
 0x139   :  { %261 = vrsqrt.f32 %v90_v55 }
 0x143   :  { %v262_v58 = vpop.eup %261 }
 0x144   :  { %v94_v60 = vmul.f32 %v262_v58, %v54_v24  ;;  %v95_v61 = vmul.f32 %v262_v58, %v55_v25  ;;  %v98_v62 = vmul.f32 %v262_v58, %v58_v26  ;;  %v99_v63 = vmul.f32 %v262_v58, %v59_v27 }
 0x146   :  { %v112_v0 = vmul.f32 %v105_v59, %v94_v60  ;;  %v113_v1 = vmul.f32 %v105_v59, %v95_v61  ;;  %v116_v2 = vmul.f32 %v105_v59, %v98_v62  ;;  %v117_v3 = vmul.f32 %v105_v59, %v99_v63 }
 0x148   :  { %v130_v5 = vadd.f32 %v123_v4, %v112_v0  ;;  %v131_v6 = vadd.f32 %v123_v4, %v113_v1  ;;  %v134_v8 = vadd.f32 %v123_v4, %v116_v2  ;;  %v135_v9 = vadd.f32 %v123_v4, %v117_v3  ;;  %v140_v4 = vld [vmem:[%s376_s4] sm:$0xff] }
 0x14a   :  { %v142_v7 = vadd.f32 %v131_v6, %v130_v5  ;;  %v148_v10 = vadd.f32 %v135_v9, %v134_v8 }
 0x14c   :  { %143 = vadd.xlane.f32.xlu1 %v142_v7 }
 0x150   :  { %149 = vadd.xlane.f32.xlu1 %v148_v10 }
 0x169   :  { %v81_v11 = vpop.xlane.xlu1 %80 }
 0x16a   :  { %v85_v13 = vmul.f32 0.00390625, %v81_v11 }
 0x16c   :  { %v87_v14 = vadd.f32 %v85_v13, %v83_v12 }
 0x16d   :  { %v128_v26 = vpop.permute.xlu1 %127 }
 0x16e   :  { %v89_v15 = vmul.f32 0.5, %v87_v14 }
 0x170   :  { %v91_v16 = vadd.f32 1e-05, %v89_v15 }
 0x172   :  { %263 = vrsqrt.f32 %v91_v16 }
 0x17c   :  { %v264_v17 = vpop.eup %263 }
 0x17d   :  { %v96_v18 = vmul.f32 %v264_v17, %v56_v34  ;;  %v97_v19 = vmul.f32 %v264_v17, %v57_v35  ;;  %v100_v20 = vmul.f32 %v264_v17, %v60_v43  ;;  %v101_v21 = vmul.f32 %v264_v17, %v61_v44  ;;  %v138_v34 = vld [vmem:[%s375_s3] sm:$0xff] }
 0x17f   :  { %v114_v22 = vmul.f32 %v110_v57, %v96_v18  ;;  %v115_v23 = vmul.f32 %v110_v57, %v97_v19  ;;  %v118_v24 = vmul.f32 %v110_v57, %v100_v20  ;;  %v119_v25 = vmul.f32 %v110_v57, %v101_v21 }
 0x181   :  { %v132_v27 = vadd.f32 %v128_v26, %v114_v22  ;;  %v133_v28 = vadd.f32 %v128_v26, %v115_v23  ;;  %v136_v29 = vadd.f32 %v128_v26, %v118_v24  ;;  %v137_v30 = vadd.f32 %v128_v26, %v119_v25 }
 0x183   :  { %v145_v31 = vadd.f32 %v133_v28, %v132_v27  ;;  %v151_v32 = vadd.f32 %v137_v30, %v136_v29 }
 0x185   :  { %146 = vadd.xlane.f32.xlu0 %v145_v31  ;;  %152 = vadd.xlane.f32.xlu1 %v151_v32 }
 0x196   :  { %217 = vperm.xlu1 %260, %v139_v33  }
 0x19b   :  { %212 = vperm.xlu0 %259, %v138_v34  }
 0x1d9   :  { %v144_v35 = vpop.xlane.xlu1 %143 }
 0x1da   :  { %v154_v37 = vmul.f32 0.00390625, %v144_v35 }
 0x1dd   :  { %v150_v36 = vpop.xlane.xlu1 %149 }
 0x1de   :  { %v156_v38 = vmul.f32 0.00390625, %v150_v36 }
 0x1e0   :  { %v158_v39 = vadd.f32 %v156_v38, %v154_v37 }
 0x1e2   :  { %v160_v40 = vmul.f32 0.5, %v158_v39 }
 0x1e4   :  { %v166_v41 = vsub.f32 %v134_v8, %v160_v40  ;;  %v167_v42 = vsub.f32 %v135_v9, %v160_v40  ;;  %v162_v43 = vsub.f32 %v130_v5, %v160_v40  ;;  %v163_v44 = vsub.f32 %v131_v6, %v160_v40 }
 0x1e6   :  { %v174_v45 = vmul.f32 %v166_v41, %v166_v41  ;;  %v175_v46 = vmul.f32 %v167_v42, %v167_v42  ;;  %v170_v47 = vmul.f32 %v162_v43, %v162_v43  ;;  %v171_v48 = vmul.f32 %v163_v44, %v163_v44 }
 0x1e8   :  { %v184_v49 = vadd.f32 %v175_v46, %v174_v45  ;;  %v178_v50 = vadd.f32 %v171_v48, %v170_v47 }
 0x1ea   :  { %185 = vadd.xlane.f32.xlu0 %v184_v49  ;;  %179 = vadd.xlane.f32.xlu1 %v178_v50 }
 0x200   :  { %235 = vperm.xlu0 %259, %v141_v51  }
 0x212   :  { %v153_v52 = vpop.xlane.xlu1 %152  ;;  %v147_v53 = vpop.xlane.xlu0 %146 }
 0x213   :  { %v157_v54 = vmul.f32 0.00390625, %v153_v52  ;;  %v155_v55 = vmul.f32 0.00390625, %v147_v53 }
 0x215   :  { %v159_v56 = vadd.f32 %v157_v54, %v155_v55 }
 0x216   :  { %v218_v5 = vpop.permute.xlu1 %217 }
 0x217   :  { %v161_v57 = vmul.f32 0.5, %v159_v56 }
 0x219   :  { %v164_v58 = vsub.f32 %v132_v27, %v161_v57  ;;  %v165_v59 = vsub.f32 %v133_v28, %v161_v57  ;;  %v168_v60 = vsub.f32 %v136_v29, %v161_v57  ;;  %v169_v61 = vsub.f32 %v137_v30, %v161_v57 }
 0x21a   :  { %v213_v6 = vpop.permute.xlu0 %212 }
 0x21b   :  { %v172_v62 = vmul.f32 %v164_v58, %v164_v58  ;;  %v173_v63 = vmul.f32 %v165_v59, %v165_v59  ;;  %v176_v1 = vmul.f32 %v168_v60, %v168_v60  ;;  %v177_v2 = vmul.f32 %v169_v61, %v169_v61 }
 0x21d   :  { %v181_v0 = vadd.f32 %v173_v63, %v172_v62  ;;  %v187_v3 = vadd.f32 %v177_v2, %v176_v1 }
 0x21f   :  { %182 = vadd.xlane.f32.xlu1 %v181_v0 }
 0x223   :  { %188 = vadd.xlane.f32.xlu1 %v187_v3 }
 0x234   :  { %230 = vperm.xlu1 %260, %v140_v4  }
 0x277   :  { %v180_v7 = vpop.xlane.xlu1 %179  ;;  %v186_v8 = vpop.xlane.xlu0 %185 }
 0x278   :  { %v190_v9 = vmul.f32 0.00390625, %v180_v7  ;;  %v192_v10 = vmul.f32 0.00390625, %v186_v8 }
 0x27a   :  { %v194_v11 = vadd.f32 %v192_v10, %v190_v9 }
 0x27c   :  { %v196_v12 = vmul.f32 0.5, %v194_v11 }
 0x27e   :  { %v198_v13 = vadd.f32 1e-05, %v196_v12 }
 0x280   :  { %265 = vrsqrt.f32 %v198_v13 }
 0x28a   :  { %v266_v14 = vpop.eup %265 }
 0x28b   :  { %v202_v16 = vmul.f32 %v266_v14, %v162_v43  ;;  %v203_v17 = vmul.f32 %v266_v14, %v163_v44  ;;  %v206_v18 = vmul.f32 %v266_v14, %v166_v41  ;;  %v207_v20 = vmul.f32 %v266_v14, %v167_v42  ;;  %v236_v44 = vpop.permute.xlu0 %235 }
 0x28d   :  { %v220_v24 = vmul.f32 %v213_v6, %v202_v16  ;;  %v221_v25 = vmul.f32 %v213_v6, %v203_v17  ;;  %v224_v26 = vmul.f32 %v213_v6, %v206_v18  ;;  %v225_v28 = vmul.f32 %v213_v6, %v207_v20 }
 0x2ac   :  { %v183_v15 = vpop.xlane.xlu1 %182 }
 0x2ad   :  { %v191_v21 = vmul.f32 0.00390625, %v183_v15 }
 0x2b0   :  { %v189_v19 = vpop.xlane.xlu1 %188 }
 0x2b1   :  { %v193_v22 = vmul.f32 0.00390625, %v189_v19 }
 0x2b3   :  { %v195_v23 = vadd.f32 %v193_v22, %v191_v21 }
 0x2b4   :  { %v231_v27 = vpop.permute.xlu1 %230 }
 0x2b5   :  { %v197_v29 = vmul.f32 0.5, %v195_v23  ;;  %v238_v30 = vadd.f32 %v231_v27, %v220_v24  ;;  %v239_v31 = vadd.f32 %v231_v27, %v221_v25  ;;  %v242_v32 = vadd.f32 %v231_v27, %v224_v26 }
 0x2b6   :  { %v243_v33 = vadd.f32 %v231_v27, %v225_v28 }
 0x2b7   :  { %v199_v34 = vadd.f32 1e-05, %v197_v29  ;;  %246 = vst [vmem:[%s377_s5] sm:$0xff] %v238_v30  ;;  %247 = vst [vmem:[%s377_s5 + $0x8] sm:$0xff] %v239_v31 }
 0x2b8   :  { %250 = vst [vmem:[%s377_s5 + $0x20] sm:$0xff] %v242_v32  ;;  %251 = vst [vmem:[%s377_s5 + $0x28] sm:$0xff] %v243_v33 }
 0x2b9   :  { %267 = vrsqrt.f32 %v199_v34 }
 0x2c3   :  { %v268_v35 = vpop.eup %267 }
 0x2c4   :  { %v204_v36 = vmul.f32 %v268_v35, %v164_v58  ;;  %v205_v37 = vmul.f32 %v268_v35, %v165_v59  ;;  %v208_v38 = vmul.f32 %v268_v35, %v168_v60  ;;  %v209_v39 = vmul.f32 %v268_v35, %v169_v61 }
 0x2c6   :  { %v222_v40 = vmul.f32 %v218_v5, %v204_v36  ;;  %v223_v41 = vmul.f32 %v218_v5, %v205_v37  ;;  %v226_v42 = vmul.f32 %v218_v5, %v208_v38  ;;  %v227_v43 = vmul.f32 %v218_v5, %v209_v39 }
 0x2c8   :  { %v240_v45 = vadd.f32 %v236_v44, %v222_v40  ;;  %v241_v46 = vadd.f32 %v236_v44, %v223_v41  ;;  %v244_v47 = vadd.f32 %v236_v44, %v226_v42  ;;  %v245_v48 = vadd.f32 %v236_v44, %v227_v43 }
 0x2ca   :  { %248 = vst [vmem:[%s377_s5 + $0x10] sm:$0xff] %v240_v45  ;;  %249 = vst [vmem:[%s377_s5 + $0x18] sm:$0xff] %v241_v46 }
 0x2cb   :  { %252 = vst [vmem:[%s377_s5 + $0x30] sm:$0xff] %v244_v47  ;;  %253 = vst [vmem:[%s377_s5 + $0x38] sm:$0xff] %v245_v48 }

// kernel: mock_module_forward.2
= control target key start
LH: loop header
LB: loop body
LE: loop exit
PB: predicated region body
PF: predicated region fallthrough
CT: control target
= control target key end

     0   :  { %8 = vsyncpa [#allocation4], 0  ;;  %s3274_s0 = inlined_call_operand.vmem [shape: f32[68], index: 0, kind: input, shape index: {}]   ;;  %s3275_s1 = inlined_call_operand.vmem [shape: f32[4], index: 1, kind: input, shape index: {}]   ;;  %s3276_s2 = inlined_call_operand.vmem [shape: f32[2,16,16], index: 2, kind: input, shape index: {}]   ;;  %s3277_s3 = inlined_call_operand.hbm [shape: f32[2,4,4], index: 3, kind: output, shape index: {}]  }
   0x1   :  { %9 = vsyncpa [#allocation6], 0 }
   0x2   :  { %10 = vsyncpa [#allocation3], 0  ;;  %s17_s14 = sshll.u32 %s3274_s0, 4  ;;  %s27_s17 = sshll.u32 %s3275_s1, 4  ;;  %s18_s14 = int_to_ptr.vmem [resolvable:$true] %s17_s14  ;;  %s28_s17 = int_to_ptr.vmem [resolvable:$true] %s27_s17 }
   0x3   :  { %s1696_s18 = scalar_lea.vmem %s18_s14, 16  ;;  %p1701_p1 = scmp.lt.s32.totalorder %s18_s14, %s18_s14 }
   0x4   :  { %p1697_p0 = scmp.ne.s32.totalorder %s18_s14, %s1696_s18  ;;  %p1702_p2 = scmp.lt.s32.totalorder %s1696_s18, %s1696_s18 }
   0x6   :  { %p1703_p3 = por %p1702_p2, %p1701_p1 }
   0x8   :  { %p1704_p4 = pnand %p1703_p3, %p1697_p0 }
   0xa   :  { %1707 = shalt.err (!%p1704_p4)
}
   0xb   :  { %s1748_s19 = smov [#allocation2]   ;;  %s1708_s20 = scalar_lea.vmem %s28_s17, 16 }
   0xc   :  { %20 = dma.vmem_to_smem %s18_s14, 16, %s1748_s19, [#allocation4]  }
   0xd   :  { %p1709_p5 = scmp.ne.s32.totalorder %s28_s17, %s1708_s20  ;;  %p1713_p6 = scmp.lt.s32.totalorder %s28_s17, %s28_s17 }
   0xe   :  { %p1714_p7 = scmp.lt.s32.totalorder %s1708_s20, %s1708_s20 }
  0x10   :  { %p1715_p8 = por %p1714_p7, %p1713_p6 }
  0x12   :  { %p1716_p9 = pnand %p1715_p8, %p1709_p5 }
  0x14   :  { %1719 = shalt.err (!%p1716_p9)
}
  0x15   :  { %s1749_s0 = smov [#allocation5]  }
  0x16   :  { %30 = dma.vmem_to_smem %s28_s17, 16, %s1749_s0, [#allocation6]  }
  0x17   :  { %1742 = dma.done.wait [#allocation4], 16  }
  0x18   :  { %1743 = vsyncadd [#allocation4], 4294967280 }
  0x19   :  { %1744 = dma.done.wait [#allocation6], 16  }
  0x1a   :  { %1745 = vsyncadd [#allocation6], 4294967280 }
  0x1b   :  { %39 = sfence }
  0x1c   :  { %s1618_s1 = sld [smem:[#allocation2 + $0x2]]  ;;  %s1617_s21 = sld [smem:[#allocation2 + $0x1]]  ;;  %v1786_v0 = vld [vmem:[%s3276_s2] sm:$0xff]  ;;  %v1791_v2 = vld [vmem:[%s3276_s2 + $0x10] sm:$0xff]  ;;  %v1797_v5 = vld [vmem:[%s3276_s2 + $0x18] sm:$0xff]  ;;  %vm116_vm0 = vcmask 1046528  }
  0x1d   :  { %s1620_s22 = sld [smem:[#allocation2 + $0x4]]  ;;  %s1621_s23 = sld [smem:[#allocation2 + $0x5]]  ;;  %v1803_v7 = vld [vmem:[%s3276_s2 + $0x8] sm:$0xff]  ;;  %vm205_vm1 = vcmask 1045504   ;;  %vm718_vm2 = vcmask 1044480   ;;  %vm871_vm3 = vcmask 1043456  }
  0x1e   :  { %s1623_s30 = sld [smem:[#allocation2 + $0x7]]  ;;  %s1750_s6 = smov 126   ;;  %vm1596_vm4 = vcmask 27648  }
  0x1f   :  { %s1751_s7 = smov 127   ;;  %s1619_s2 = sld [smem:[#allocation2 + $0x3]] }
  0x20   :  { %s1622_s8 = sld [smem:[#allocation2 + $0x6]]  ;;  %s1839_s9 = sld [smem:[#allocation2 + $0x8]] }
  0x21   :  { %s44_s10 = sld [smem:[#allocation2]]  ;;  %s1924_s12 = sld [smem:[#allocation2 + $0xa]] }
  0x22   :  { %v81_v1 = vstv %s1618_s1  ;;  %v55_v4 = vstv %s1617_s21  ;;  %s284_s11 = sld [smem:[#allocation5]]  ;;  %s1926_s13 = sld [smem:[#allocation2 + $0xb]] }
  0x23   :  { %v82_v3 = vmul.f32 %v81_v1, %v1786_v0  ;;  %v56_v6 = vmul.f32 %v55_v4, %v1786_v0  ;;  %v84_v8 = vmul.f32 %v81_v1, %v1791_v2  ;;  %v132_v9 = vstv %s1620_s22  ;;  %s1928_s14 = sld [smem:[#allocation2 + $0xc]]  ;;  %s1930_s15 = sld [smem:[#allocation2 + $0xd]] }
  0x24   :  { %v164_v10 = vstv %s1621_s23  ;;  %v58_v11 = vmul.f32 %v55_v4, %v1791_v2  ;;  %v135_v12 = vmul.f32 %v132_v9, %v1791_v2  ;;  %v1811_v13 = vmul.f32 %v132_v9, %v1797_v5  ;;  %s1932_s16 = sld [smem:[#allocation2 + $0xf]]  ;;  %s1934_s17 = sld [smem:[#allocation2 + $0x10]] }
  0x25   :  { %90 = vrot.lane.b32.xlu1 %v82_v3, %s1750_s6  ;;  %64 = vrot.lane.b32.xlu0 %v56_v6, %s1751_s7  ;;  %v133_v14 = vmul.f32 %v132_v9, %v1786_v0  ;;  %v1815_v15 = vmul.f32 %v132_v9, %v1803_v7  ;;  %v167_v16 = vmul.f32 %v164_v10, %v1791_v2  ;;  %v221_v26 = vstv %s1623_s30  ;;  %s1936_s18 = sld [smem:[#allocation2 + $0x11]]  ;;  %s1938_s19 = sld [smem:[#allocation2 + $0x12]] }
  0x26   :  { %v1819_v17 = vmul.f32 %v164_v10, %v1797_v5  ;;  %v165_v18 = vmul.f32 %v164_v10, %v1786_v0  ;;  %v1823_v19 = vmul.f32 %v164_v10, %v1803_v7  ;;  %v59_v20 = vmul.f32 %v55_v4, %v1797_v5  ;;  %s1941_s20 = sld [smem:[#allocation2 + $0x14]]  ;;  %s1943_s0 = sld [smem:[#allocation2 + $0x15]] }
  0x27   :  { %v57_v21 = vmul.f32 %v55_v4, %v1803_v7  ;;  %v144_v22 = vrot.slane %v135_v12, 1  ;;  %v145_v23 = vrot.slane %v1811_v13, 1  ;;  %v141_v24 = vrot.slane %v133_v14, 1  ;;  %s1946_s1 = sld [smem:[#allocation2 + $0x16]]  ;;  %s1948_s21 = sld [smem:[#allocation2 + $0x17]] }
  0x28   :  { %v142_v25 = vrot.slane %v1815_v15, 1  ;;  %v176_v27 = vrot.slane %v167_v16, 1  ;;  %v177_v28 = vrot.slane %v1819_v17, 1  ;;  %v173_v29 = vrot.slane %v165_v18, 1  ;;  %s1950_s22 = sld [smem:[#allocation2 + $0x19]]  ;;  %s1952_s23 = sld [smem:[#allocation2 + $0x1a]] }
  0x29   :  { %94 = vrot.lane.b32.xlu1 %v84_v8, %s1750_s6  ;;  %68 = vrot.lane.b32.xlu0 %v58_v11, %s1751_s7  ;;  %v174_v30 = vrot.slane %v1823_v19, 1  ;;  %v146_v31 = vsel %vm116_vm0, %v144_v22, %v145_v23  ;;  %v224_v32 = vmul.f32 %v221_v26, %v1791_v2  ;;  %v85_v34 = vmul.f32 %v81_v1, %v1797_v5  ;;  %s1954_s24 = sld [smem:[#allocation2 + $0x1b]]  ;;  %s1956_s25 = sld [smem:[#allocation2 + $0x1c]] }
  0x2a   :  { %v143_v33 = vsel %vm116_vm0, %v141_v24, %v142_v25  ;;  %v178_v35 = vsel %vm116_vm0, %v176_v27, %v177_v28  ;;  %v83_v37 = vmul.f32 %v81_v1, %v1803_v7  ;;  %v225_v38 = vmul.f32 %v221_v26, %v1797_v5  ;;  %s1958_s26 = sld [smem:[#allocation2 + $0x1e]]  ;;  %s1960_s27 = sld [smem:[#allocation2 + $0x1f]] }
  0x2b   :  { %v175_v36 = vsel %vm116_vm0, %v173_v29, %v174_v30  ;;  %v222_v39 = vmul.f32 %v221_v26, %v1786_v0  ;;  %v223_v40 = vmul.f32 %v221_v26, %v1803_v7  ;;  %v107_v41 = vstv %s1619_s2  ;;  %s1964_s28 = sld [smem:[#allocation2 + $0x20]]  ;;  %s1966_s29 = sld [smem:[#allocation2 + $0x21]] }
  0x2c   :  { %v196_v42 = vstv %s1622_s8  ;;  %v233_v43 = vrot.slane %v224_v32, 2  ;;  %v110_v44 = vmul.f32 %v107_v41, %v1791_v2  ;;  %v1859_v45 = vmul.f32 %v107_v41, %v1797_v5  ;;  %s1752_s30 = smov 125   ;;  %s1753_s4 = smov 124  }
  0x2d   :  { %70 = vrot.lane.b32.xlu1 %v59_v20, %s1751_s7  ;;  %66 = vrot.lane.b32.xlu0 %v57_v21, %s1751_s7  ;;  %v108_v46 = vmul.f32 %v107_v41, %v1786_v0  ;;  %v1863_v47 = vmul.f32 %v107_v41, %v1803_v7  ;;  %v199_v48 = vmul.f32 %v196_v42, %v1791_v2  ;;  %v234_v59 = vrot.slane %v225_v38, 2  ;;  %s2470_s5 = sld [smem:[#allocation2 + $0xe]]  ;;  %s2484_s2 = sld [smem:[#allocation2 + $0x13]] }
  0x2e   :  { %v1867_v49 = vmul.f32 %v196_v42, %v1797_v5  ;;  %v197_v50 = vmul.f32 %v196_v42, %v1786_v0  ;;  %v120_v51 = vrot.slane %v110_v44, 1  ;;  %v121_v52 = vrot.slane %v1859_v45, 1  ;;  %s2500_s8 = sld [smem:[#allocation2 + $0x18]] }
  0x2f   :  { %v117_v53 = vrot.slane %v108_v46, 1  ;;  %v1872_v54 = vmul.f32 %v196_v42, %v1803_v7  ;;  %v118_v55 = vrot.slane %v1863_v47, 1  ;;  %v209_v56 = vrot.slane %v199_v48, 2 }
  0x30   :  { %v210_v57 = vrot.slane %v1867_v49, 2  ;;  %v206_v58 = vrot.slane %v197_v50, 2  ;;  %v253_v60 = vstv %s1839_s9  ;;  %v122_v61 = vsel %vm116_vm0, %v120_v51, %v121_v52  ;;  %s2502_s9 = sld [smem:[#allocation2 + $0x1d]] }
  0x31   :  { %151 = vrot.lane.b32.xlu1 %v146_v31, %s1751_s7  ;;  %147 = vrot.lane.b32.xlu0 %v143_v33, %s1751_s7  ;;  %v207_v62 = vrot.slane %v1872_v54, 2  ;;  %v230_v63 = vrot.slane %v222_v39, 2  ;;  %v231_v1 = vrot.slane %v223_v40, 2  ;;  %v119_v3 = vsel %vm116_vm0, %v117_v53, %v118_v55 }
  0x32   :  { %v211_v4 = vsel %vm205_vm1, %v209_v56, %v210_v57  ;;  %v235_v8 = vsel %vm205_vm1, %v233_v43, %v234_v59  ;;  %v256_v9 = vmul.f32 %v253_v60, %v1791_v2  ;;  %v257_v10 = vmul.f32 %v253_v60, %v1797_v5 }
  0x33   :  { %v208_v6 = vsel %vm205_vm1, %v206_v58, %v207_v62  ;;  %v232_v11 = vsel %vm205_vm1, %v230_v63, %v231_v1  ;;  %v254_v12 = vmul.f32 %v253_v60, %v1786_v0  ;;  %v255_v14 = vmul.f32 %v253_v60, %v1803_v7 }
  0x34   :  { %v265_v16 = vrot.slane %v256_v9, 2  ;;  %v266_v18 = vrot.slane %v257_v10, 2  ;;  %v45_v13 = vstv %s44_s10  ;;  %v1962_v56 = vstv %s284_s11  ;;  %s1625_s10 = sld [smem:[#allocation2 + $0x9]] }
  0x35   :  { %183 = vrot.lane.b32.xlu1 %v178_v35, %s1750_s6  ;;  %179 = vrot.lane.b32.xlu0 %v175_v36, %s1750_s6  ;;  %v262_v20 = vrot.slane %v254_v12, 2  ;;  %v263_v21 = vrot.slane %v255_v14, 2  ;;  %v46_v15 = vmul.f32 %v45_v13, %v1786_v0  ;;  %v48_v26 = vmul.f32 %v45_v13, %v1791_v2  ;;  %s1650_s11 = sld [smem:[#allocation5 + $0x1]] }
  0x36   :  { %v267_v22 = vsel %vm205_vm1, %v265_v16, %v266_v18  ;;  %v49_v46 = vmul.f32 %v45_v13, %v1797_v5  ;;  %v47_v48 = vmul.f32 %v45_v13, %v1803_v7  ;;  %v1969_v60 = vstv %s1924_s12  ;;  %s1652_s12 = sld [smem:[#allocation2 + $0x23]] }
  0x37   :  { %v264_v24 = vsel %vm205_vm1, %v262_v20, %v263_v21  ;;  %v1975_v63 = vstv %s1928_s14  ;;  %v1987_v9 = vstv %s1936_s18  ;;  %v1990_v10 = vstv %s1938_s19  ;;  %s2876_s14 = sld [smem:[#allocation2 + $0x25]]  ;;  %s2914_s18 = sld [smem:[#allocation2 + $0x2a]] }
  0x38   :  { %v1996_v16 = vstv %s1943_s0  ;;  %v2002_v20 = vstv %s1948_s21  ;;  %v2007_v13 = vstv %s1950_s22  ;;  %v2033_v47 = vstv %s1964_s28  ;;  %s2923_s19 = sld [smem:[#allocation2 + $0x2b]]  ;;  %s2933_s0 = sld [smem:[#allocation2 + $0x2e]] }
  0x39   :  { %96 = vrot.lane.b32.xlu1 %v85_v34, %s1750_s6  ;;  %92 = vrot.lane.b32.xlu0 %v83_v37, %s1750_s6  ;;  %s2938_s21 = sld [smem:[#allocation2 + $0x30]]  ;;  %s2943_s22 = sld [smem:[#allocation2 + $0x32]] }
  0x3a   :  { %s2961_s28 = sld [smem:[#allocation2 + $0x39]] }
  0x3d   :  { %240 = vrot.lane.b32.xlu1 %v235_v8, %s1751_s7  ;;  %236 = vrot.lane.b32.xlu0 %v232_v11, %s1751_s7  ;;  %v1993_v11 = vstv %s1941_s20  ;;  %s2930_s20 = sld [smem:[#allocation2 + $0x2d]] }
  0x41   :  { %153 = vrot.lane.b32.xlu1 %v145_v23, %s1751_s7  ;;  %149 = vrot.lane.b32.xlu0 %v142_v25, %s1751_s7 }
  0x45   :  { %272 = vrot.lane.b32.xlu1 %v267_v22, %s1750_s6  ;;  %268 = vrot.lane.b32.xlu0 %v264_v24, %s1750_s6 }
  0x49   :  { %185 = vrot.lane.b32.xlu1 %v177_v28, %s1750_s6  ;;  %181 = vrot.lane.b32.xlu0 %v174_v30, %s1750_s6 }
  0x4d   :  { %242 = vrot.lane.b32.xlu1 %v234_v59, %s1751_s7  ;;  %238 = vrot.lane.b32.xlu0 %v231_v1, %s1751_s7 }
  0x51   :  { %274 = vrot.lane.b32.xlu1 %v266_v18, %s1750_s6  ;;  %270 = vrot.lane.b32.xlu0 %v263_v21, %s1750_s6  ;;  %v1999_v18 = vstv %s1946_s1  ;;  %s2936_s1 = sld [smem:[#allocation2 + $0x2f]] }
  0x97   :  { %v91_v23 = vpop.permute.xlu1 %90  ;;  %v65_v25 = vpop.permute.xlu0 %64 }
  0x98   :  { %v76_v17 = vadd.f32 %v65_v25, %v46_v15  ;;  %v2010_v15 = vstv %s1952_s23  ;;  %s2949_s23 = sld [smem:[#allocation2 + $0x33]] }
  0x9a   :  { %v102_v27 = vadd.f32 %v91_v23, %v76_v17  ;;  %v2015_v17 = vstv %s1954_s24  ;;  %s2951_s24 = sld [smem:[#allocation2 + $0x34]] }
  0x9b   :  { %v95_v19 = vpop.permute.xlu1 %94  ;;  %v69_v28 = vpop.permute.xlu0 %68 }
  0x9c   :  { %v78_v29 = vadd.f32 %v69_v28, %v48_v26  ;;  %v127_v30 = vadd.f32 %v119_v3, %v102_v27  ;;  %v1978_v3 = vstv %s1930_s15  ;;  %v2018_v26 = vstv %s1956_s25  ;;  %s2891_s15 = sld [smem:[#allocation2 + $0x26]]  ;;  %s2954_s25 = sld [smem:[#allocation2 + $0x35]] }
  0x9e   :  { %v104_v31 = vadd.f32 %v95_v19, %v78_v29  ;;  %v2027_v19 = vstv %s1960_s27  ;;  %s2959_s27 = sld [smem:[#allocation2 + $0x38]] }
  0x9f   :  { %v71_v32 = vpop.permute.xlu1 %70  ;;  %v67_v33 = vpop.permute.xlu0 %66 }
  0xa0   :  { %v129_v34 = vadd.f32 %v122_v61, %v104_v31  ;;  %v79_v5 = vadd.f32 %v71_v32, %v49_v46  ;;  %v77_v7 = vadd.f32 %v67_v33, %v47_v48  ;;  %v1972_v61 = vstv %s1926_s13  ;;  %s2868_s13 = sld [smem:[#allocation2 + $0x24]] }
  0xa3   :  { %v152_v35 = vpop.permute.xlu1 %151  ;;  %v148_v36 = vpop.permute.xlu0 %147 }
  0xa4   :  { %v161_v37 = vadd.f32 %v152_v35, %v129_v34  ;;  %v159_v38 = vadd.f32 %v148_v36, %v127_v30 }
  0xa7   :  { %v184_v39 = vpop.permute.xlu1 %183  ;;  %v180_v40 = vpop.permute.xlu0 %179 }
  0xa8   :  { %v193_v0 = vadd.f32 %v184_v39, %v161_v37  ;;  %v191_v41 = vadd.f32 %v180_v40, %v159_v38 }
  0xaa   :  { %v218_v42 = vadd.f32 %v211_v4, %v193_v0  ;;  %v216_v43 = vadd.f32 %v208_v6, %v191_v41  ;;  %v1981_v4 = vstv %s1932_s16  ;;  %v1984_v6 = vstv %s1934_s17  ;;  %s2893_s16 = sld [smem:[#allocation2 + $0x28]]  ;;  %s2902_s17 = sld [smem:[#allocation2 + $0x29]] }
  0xab   :  { %v97_v2 = vpop.permute.xlu1 %96  ;;  %v93_v44 = vpop.permute.xlu0 %92 }
  0xac   :  { %v105_v58 = vadd.f32 %v97_v2, %v79_v5  ;;  %v103_v1 = vadd.f32 %v93_v44, %v77_v7 }
  0xae   :  { %v130_v21 = vadd.f32 %v121_v52, %v105_v58  ;;  %v128_v23 = vadd.f32 %v118_v55, %v103_v1  ;;  %v2024_v52 = vstv %s1958_s26  ;;  %v2036_v55 = vstv %s1966_s29  ;;  %s2956_s26 = sld [smem:[#allocation2 + $0x37]]  ;;  %s2967_s29 = sld [smem:[#allocation2 + $0x3a]] }
  0xaf   :  { %v241_v50 = vpop.permute.xlu1 %240  ;;  %v237_v51 = vpop.permute.xlu0 %236 }
  0xb0   :  { %v250_v8 = vadd.f32 %v241_v50, %v218_v42  ;;  %v248_v12 = vadd.f32 %v237_v51, %v216_v43 }
  0xb3   :  { %v154_v53 = vpop.permute.xlu1 %153  ;;  %v150_v59 = vpop.permute.xlu0 %149 }
  0xb4   :  { %v162_v27 = vadd.f32 %v154_v53, %v130_v21  ;;  %v160_v28 = vadd.f32 %v150_v59, %v128_v23 }
  0xb7   :  { %v273_v14 = vpop.permute.xlu1 %272  ;;  %v269_v24 = vpop.permute.xlu0 %268 }
  0xb8   :  { %v282_v22 = vadd.f32 %v273_v14, %v250_v8  ;;  %v280_v25 = vadd.f32 %v269_v24, %v248_v12 }
  0xba   :  { %v2021_v45 = vadd.f32 %v1962_v56, %v282_v22  ;;  %v2030_v29 = vadd.f32 %v1962_v56, %v280_v25 }
  0xbb   :  { %v186_v30 = vpop.permute.xlu1 %185  ;;  %v182_v32 = vpop.permute.xlu0 %181 }
  0xbc   :  { %v194_v31 = vadd.f32 %v186_v30, %v162_v27  ;;  %v304_v33 = vmul.f32 %v1969_v60, %v2021_v45  ;;  %v330_v34 = vmul.f32 %v1972_v61, %v2021_v45  ;;  %v356_v35 = vmul.f32 %v1975_v63, %v2021_v45 }
  0xbd   :  { %v192_v36 = vadd.f32 %v182_v32, %v160_v28  ;;  %v302_v37 = vmul.f32 %v1969_v60, %v2030_v29  ;;  %v328_v38 = vmul.f32 %v1972_v61, %v2030_v29  ;;  %v354_v39 = vmul.f32 %v1975_v63, %v2030_v29 }
  0xbe   :  { %314 = vrot.lane.b32.xlu1 %v304_v33, %s1751_s7  ;;  %v219_v0 = vadd.f32 %v210_v57, %v194_v31  ;;  %v382_v40 = vmul.f32 %v1978_v3, %v2021_v45  ;;  %v380_v41 = vmul.f32 %v1978_v3, %v2030_v29  ;;  %v2059_v42 = vmul.f32 %v1981_v4, %v2021_v45 }
  0xbf   :  { %310 = vrot.lane.b32.xlu0 %v302_v37, %s1751_s7  ;;  %v243_v2 = vpop.permute.xlu1 %242  ;;  %v217_v43 = vadd.f32 %v207_v62, %v192_v36  ;;  %v2066_v49 = vmul.f32 %v1981_v4, %v2030_v29  ;;  %v2070_v57 = vmul.f32 %v1984_v6, %v2021_v45  ;;  %v2074_v44 = vmul.f32 %v1984_v6, %v2030_v29  ;;  %v239_v48 = vpop.permute.xlu0 %238 }
  0xc0   :  { %v251_v46 = vadd.f32 %v243_v2, %v219_v0  ;;  %v441_v50 = vrot.slane %v2059_v42, 1  ;;  %v2079_v54 = vmul.f32 %v1987_v9, %v2021_v45  ;;  %v2083_v62 = vmul.f32 %v1987_v9, %v2030_v29 }
  0xc1   :  { %v249_v51 = vadd.f32 %v239_v48, %v217_v43  ;;  %v438_v5 = vrot.slane %v2066_v49, 1  ;;  %v473_v7 = vrot.slane %v2070_v57, 1  ;;  %v470_v53 = vrot.slane %v2074_v44, 1 }
  0xc2   :  { %340 = vrot.lane.b32.xlu1 %v330_v34, %s1750_s6  ;;  %v505_v58 = vrot.slane %v2079_v54, 1  ;;  %v2093_v1 = vmul.f32 %v1990_v10, %v2021_v45  ;;  %v2097_v8 = vmul.f32 %v1990_v10, %v2030_v29  ;;  %v2102_v14 = vmul.f32 %v1993_v11, %v2021_v45 }
  0xc3   :  { %336 = vrot.lane.b32.xlu0 %v328_v38, %s1750_s6  ;;  %v275_v12 = vpop.permute.xlu1 %274  ;;  %v2106_v21 = vmul.f32 %v1993_v11, %v2030_v29  ;;  %v2110_v22 = vmul.f32 %v1996_v16, %v2021_v45  ;;  %v2114_v24 = vmul.f32 %v1996_v16, %v2030_v29  ;;  %v271_v25 = vpop.permute.xlu0 %270  ;;  %v2120_v30 = vmul.f32 %v1999_v18, %v2021_v45 }
  0xc4   :  { %v283_v23 = vadd.f32 %v275_v12, %v251_v46  ;;  %v537_v27 = vrot.slane %v2093_v1, 1  ;;  %v534_v28 = vrot.slane %v2097_v8, 1  ;;  %v281_v31 = vadd.f32 %v271_v25, %v249_v51 }
  0xc5   :  { %v2133_v0 = vmul.f32 %v1999_v18, %v2030_v29  ;;  %v2141_v43 = vmul.f32 %v2002_v20, %v2021_v45  ;;  %v2149_v46 = vmul.f32 %v2007_v13, %v2021_v45  ;;  %v3328_v57 = vrot.slane %v2083_v62, 1 }
  0xc6   :  { %v2126_v36 = vadd.f32 %v1962_v56, %v283_v23  ;;  %366 = vrot.lane.b32.xlu1 %v356_v35, %s1752_s30  ;;  %v2136_v2 = vadd.f32 %v1962_v56, %v281_v31  ;;  %v2145_v35 = vmul.f32 %v2002_v20, %v2030_v29 }
  0xc7   :  { %362 = vrot.lane.b32.xlu0 %v354_v39, %s1752_s30 }
  0xc8   :  { %v305_v48 = vmul.f32 %v1969_v60, %v2126_v36  ;;  %v331_v56 = vmul.f32 %v1972_v61, %v2126_v36  ;;  %v357_v39 = vmul.f32 %v1975_v63, %v2126_v36  ;;  %v2159_v51 = vmul.f32 %v1978_v3, %v2126_v36 }
  0xc9   :  { %v303_v1 = vmul.f32 %v1969_v60, %v2136_v2  ;;  %v329_v8 = vmul.f32 %v1972_v61, %v2136_v2  ;;  %v2167_v12 = vmul.f32 %v1975_v63, %v2136_v2  ;;  %v2171_v23 = vmul.f32 %v1978_v3, %v2136_v2 }
  0xca   :  { %392 = vrot.lane.b32.xlu1 %v382_v40, %s1753_s4  ;;  %v2176_v25 = vmul.f32 %v1981_v4, %v2126_v36  ;;  %v2180_v60 = vmul.f32 %v1981_v4, %v2136_v2  ;;  %v2184_v61 = vmul.f32 %v1984_v6, %v2126_v36  ;;  %v2188_v63 = vmul.f32 %v1984_v6, %v2136_v2 }
  0xcb   :  { %388 = vrot.lane.b32.xlu0 %v380_v41, %s1753_s4  ;;  %v2193_v3 = vmul.f32 %v1987_v9, %v2126_v36  ;;  %v2197_v40 = vmul.f32 %v1987_v9, %v2136_v2  ;;  %v2201_v4 = vmul.f32 %v1990_v10, %v2126_v36  ;;  %v2205_v31 = vmul.f32 %v1990_v10, %v2136_v2 }
  0xcc   :  { %v442_v6 = vrot.slane %v2176_v25, 1  ;;  %v439_v41 = vrot.slane %v2180_v60, 1  ;;  %v3283_v38 = vrot.slane %v2184_v61, 1  ;;  %v3282_v37 = vrot.slane %v2188_v63, 1 }
  0xcd   :  { %v3281_v34 = vrot.slane %v2193_v3, 1  ;;  %v3280_v9 = vrot.slane %v2197_v40, 1  ;;  %v3279_v33 = vrot.slane %v2201_v4, 1  ;;  %v3278_v32 = vrot.slane %v2205_v31, 1 }
  0xce   :  { %316 = vrot.lane.b32.xlu1 %v305_v48, %s1751_s7  ;;  %v2221_v10 = vsel %vm116_vm0, %v441_v50, %v442_v6  ;;  %v2228_v59 = vsel %vm116_vm0, %v438_v5, %v439_v41  ;;  %v2235_v48 = vsel %vm116_vm0, %v473_v7, %v3283_v38  ;;  %v2242_v42 = vsel %vm116_vm0, %v470_v53, %v3282_v37 }
  0xcf   :  { %312 = vrot.lane.b32.xlu0 %v303_v1, %s1751_s7  ;;  %v2250_v49 = vsel %vm116_vm0, %v505_v58, %v3281_v34  ;;  %v2257_v50 = vsel %vm116_vm0, %v3328_v57, %v3280_v9  ;;  %v2262_v44 = vsel %vm116_vm0, %v537_v27, %v3279_v33  ;;  %v2267_v5 = vsel %vm116_vm0, %v534_v28, %v3278_v32 }
  0xd0   :  { %v2271_v54 = vmul.f32 %v1993_v11, %v2126_v36  ;;  %v2275_v62 = vmul.f32 %v1993_v11, %v2136_v2  ;;  %v2279_v7 = vmul.f32 %v1996_v16, %v2126_v36  ;;  %v2283_v53 = vmul.f32 %v1996_v16, %v2136_v2 }
  0xd1   :  { %v2287_v58 = vmul.f32 %v1999_v18, %v2126_v36  ;;  %v2291_v27 = vmul.f32 %v1999_v18, %v2136_v2  ;;  %v654_v28 = vrot.slane %v2133_v0, 2  ;;  %v2296_v11 = vmul.f32 %v2002_v20, %v2126_v36 }
  0xd2   :  { %342 = vrot.lane.b32.xlu1 %v331_v56, %s1750_s6  ;;  %v3294_v1 = vrot.slane %v2271_v54, 2  ;;  %v3289_v16 = vrot.slane %v2275_v62, 2  ;;  %v3288_v57 = vrot.slane %v2279_v7, 2  ;;  %v3287_v32 = vrot.slane %v2283_v53, 2 }
  0xd3   :  { %338 = vrot.lane.b32.xlu0 %v329_v8, %s1750_s6  ;;  %v3286_v18 = vrot.slane %v2287_v58, 2  ;;  %v3285_v0 = vrot.slane %v2291_v27, 2  ;;  %v689_v33 = vrot.slane %v2141_v43, 2  ;;  %v3284_v9 = vrot.slane %v2296_v11, 2 }
  0xd4   :  { %v3329_v56 = vrot.slane %v2102_v14, 2  ;;  %v3330_v37 = vrot.slane %v2106_v21, 2  ;;  %v3331_v43 = vrot.slane %v2110_v22, 2  ;;  %v3332_v14 = vrot.slane %v2114_v24, 2 }
  0xd5   :  { %v3333_v21 = vrot.slane %v2120_v30, 2  ;;  %v2346_v22 = vsel %vm205_vm1, %v654_v28, %v3285_v0  ;;  %v2355_v24 = vmul.f32 %v2002_v20, %v2136_v2  ;;  %v686_v30 = vrot.slane %v2145_v35, 2 }
  0xd6   :  { %v2313_v34 = vsel %vm205_vm1, %v3329_v56, %v3294_v1  ;;  %v2320_v8 = vsel %vm205_vm1, %v3330_v37, %v3289_v16  ;;  %v2327_v38 = vsel %vm205_vm1, %v3331_v43, %v3288_v57  ;;  %v2334_v56 = vsel %vm205_vm1, %v3332_v14, %v3287_v32  ;;  %368 = vrot.lane.b32.xlu1 %v357_v39, %s1752_s30 }
  0xd7   :  { %v2341_v37 = vsel %vm205_vm1, %v3333_v21, %v3286_v18  ;;  %v2351_v43 = vsel %vm205_vm1, %v689_v33, %v3284_v9  ;;  %v2361_v14 = vmul.f32 %v2007_v13, %v2126_v36  ;;  %v746_v28 = vrot.slane %v2149_v46, 3  ;;  %364 = vrot.lane.b32.xlu0 %v2167_v12, %s1752_s30 }
  0xd8   :  { %v735_v21 = vmul.f32 %v2007_v13, %v2030_v29  ;;  %v3293_v33 = vrot.slane %v2355_v24, 2  ;;  %v2371_v20 = vmul.f32 %v2007_v13, %v2136_v2  ;;  %v769_v35 = vmul.f32 %v2010_v15, %v2021_v45 }
  0xd9   :  { %v2377_v39 = vmul.f32 %v2010_v15, %v2126_v36  ;;  %v3290_v46 = vrot.slane %v2361_v14, 3  ;;  %v767_v0 = vmul.f32 %v2010_v15, %v2030_v29  ;;  %v2384_v12 = vmul.f32 %v2010_v15, %v2136_v2 }
  0xda   :  { %v743_v9 = vrot.slane %v735_v21, 3  ;;  %v2389_v13 = vsel %vm205_vm1, %v686_v30, %v3293_v33  ;;  %v3292_v18 = vrot.slane %v2371_v20, 3  ;;  %v778_v32 = vrot.slane %v769_v35, 3  ;;  %394 = vrot.lane.b32.xlu1 %v2159_v51, %s1753_s4 }
  0xdb   :  { %3334 = vst [vmem:[#allocation11_spill] sm:$0xff] %v2377_v39  ;;  %3335 = vst [vmem:[#allocation12_spill] sm:$0xff] %v2384_v12  ;;  %v3291_v57 = vrot.slane %v2377_v39, 3  ;;  %v2398_v21 = vsel %vm718_vm2, %v746_v28, %v3290_v46  ;;  %v775_v15 = vrot.slane %v767_v0, 3  ;;  %v3295_v16 = vrot.slane %v2384_v12, 3  ;;  %390 = vrot.lane.b32.xlu0 %v2171_v23, %s1753_s4 }
  0xdc   :  { %v801_v30 = vmul.f32 %v2015_v17, %v2021_v45  ;;  %v2408_v35 = vsel %vm718_vm2, %v743_v9, %v3292_v18  ;;  %v2417_v0 = vmul.f32 %v2015_v17, %v2126_v36  ;;  %v799_v28 = vmul.f32 %v2015_v17, %v2030_v29 }
  0xdd   :  { %v2413_v51 = vsel %vm718_vm2, %v778_v32, %v3291_v57  ;;  %v2424_v23 = vsel %vm718_vm2, %v775_v15, %v3295_v16  ;;  %v2428_v9 = vmul.f32 %v2015_v17, %v2136_v2  ;;  %v833_v32 = vmul.f32 %v2018_v26, %v2021_v45 }
  0xde   :  { %3336 = vst [vmem:[#allocation13_spill] sm:$0xff] %v2417_v0  ;;  %v810_v46 = vrot.slane %v801_v30, 3  ;;  %v3297_v57 = vrot.slane %v2417_v0, 3  ;;  %v807_v18 = vrot.slane %v799_v28, 3  ;;  %v2435_v33 = vmul.f32 %v2018_v26, %v2126_v36  ;;  %450 = vrot.lane.b32.xlu1 %v442_v6, %s1751_s7 }
  0xdf   :  { %3337 = vst [vmem:[#allocation14_spill] sm:$0xff] %v2428_v9  ;;  %v831_v1 = vmul.f32 %v2018_v26, %v2030_v29  ;;  %v3299_v17 = vrot.slane %v2428_v9, 3  ;;  %v842_v15 = vrot.slane %v833_v32, 3  ;;  %v2445_v30 = vmul.f32 %v2018_v26, %v2136_v2  ;;  %446 = vrot.lane.b32.xlu0 %v439_v41, %s1751_s7 }
  0xe0   :  { %3338 = vst [vmem:[#allocation15_spill] sm:$0xff] %v2435_v33  ;;  %v890_v28 = vmul.f32 %v2024_v52, %v2021_v45  ;;  %v2455_v16 = vsel %vm718_vm2, %v810_v46, %v3297_v57  ;;  %v3298_v25 = vrot.slane %v2435_v33, 3  ;;  %v2460_v32 = vmul.f32 %v2024_v52, %v2126_v36 }
  0xe1   :  { %3339 = vst [vmem:[#allocation16_spill] sm:$0xff] %v2445_v30  ;;  %v839_v6 = vrot.slane %v831_v1, 3  ;;  %v2465_v26 = vsel %vm718_vm2, %v807_v18, %v3299_v17  ;;  %v3300_v60 = vrot.slane %v2445_v30, 3  ;;  %v888_v0 = vmul.f32 %v2024_v52, %v2030_v29 }
  0xe2   :  { %3340 = vst [vmem:[#allocation17_spill] sm:$0xff] %v2460_v32  ;;  %v899_v41 = vrot.slane %v890_v28, 4  ;;  %v2475_v1 = vsel %vm718_vm2, %v842_v15, %v3298_v25  ;;  %v3304_v46 = vrot.slane %v2460_v32, 4  ;;  %v2480_v57 = vmul.f32 %v2024_v52, %v2136_v2 }
  0xe3   :  { %v922_v18 = vmul.f32 %v2027_v19, %v2021_v45  ;;  %v3342_v28 = vrot.slane %v2184_v61, 1  ;;  %v2492_v15 = vsel %vm718_vm2, %v839_v6, %v3300_v60  ;;  %v896_v25 = vrot.slane %v888_v0, 4 }
  0xe4   :  { %3341 = vst [vmem:[#allocation18_spill] sm:$0xff] %v2480_v57  ;;  %v2496_v17 = vmul.f32 %v2027_v19, %v2126_v36  ;;  %v920_v52 = vmul.f32 %v2027_v19, %v2030_v29  ;;  %v3344_v61 = vrot.slane %v2188_v63, 1  ;;  %v2510_v6 = vsel %vm871_vm3, %v899_v41, %v3304_v46 }
  0xe5   :  { %482 = vrot.lane.b32.xlu1 %v3342_v28, %s1750_s6  ;;  %v3305_v0 = vrot.slane %v2480_v57, 4  ;;  %v931_v28 = vrot.slane %v922_v18, 4  ;;  %v2515_v60 = vmul.f32 %v2027_v19, %v2136_v2  ;;  %v954_v9 = vmul.f32 %v2033_v47, %v2021_v45 }
  0xe6   :  { %3343 = vst [vmem:[#allocation19_spill] sm:$0xff] %v2496_v17  ;;  %478 = vrot.lane.b32.xlu0 %v3344_v61, %s1750_s6  ;;  %v3307_v30 = vrot.slane %v2496_v17, 4  ;;  %v928_v33 = vrot.slane %v920_v52, 4  ;;  %v2522_v63 = vmul.f32 %v2033_v47, %v2126_v36  ;;  %v952_v19 = vmul.f32 %v2033_v47, %v2030_v29 }
  0xe7   :  { %3345 = vst [vmem:[#allocation20_spill] sm:$0xff] %v2515_v60  ;;  %v2527_v41 = vsel %vm871_vm3, %v896_v25, %v3305_v0  ;;  %v2534_v52 = vmul.f32 %v2033_v47, %v2136_v2  ;;  %v3348_v61 = vrot.slane %v2193_v3, 1  ;;  %v963_v25 = vrot.slane %v954_v9, 4 }
  0xe8   :  { %3346 = vst [vmem:[#allocation21_spill] sm:$0xff] %v2522_v63  ;;  %v2542_v46 = vsel %vm871_vm3, %v931_v28, %v3307_v30  ;;  %v3310_v0 = vrot.slane %v2522_v63, 4  ;;  %v986_v18 = vmul.f32 %v2036_v55, %v2021_v45  ;;  %v3349_v47 = vrot.slane %v2197_v40, 1 }
  0xe9   :  { %3347 = vst [vmem:[#allocation22_spill] sm:$0xff] %v2534_v52  ;;  %514 = vrot.lane.b32.xlu1 %v3348_v61, %s1752_s30  ;;  %v3350_v57 = vrot.slane %v2515_v60, 4  ;;  %v960_v28 = vrot.slane %v952_v19, 4  ;;  %v3313_v61 = vrot.slane %v2534_v52, 4  ;;  %v2558_v9 = vmul.f32 %v2036_v55, %v2126_v36 }
  0xea   :  { %510 = vrot.lane.b32.xlu0 %v3349_v47, %s1752_s30  ;;  %v2563_v30 = vsel %vm871_vm3, %v963_v25, %v3310_v0  ;;  %v984_v40 = vmul.f32 %v2036_v55, %v2030_v29  ;;  %v995_v47 = vrot.slane %v986_v18, 4  ;;  %v557_v63 = vstv %s2484_s2  ;;  %s2975_s2 = sld [smem:[#allocation2 + $0x36]] }
  0xeb   :  { %v2553_v3 = vsel %vm871_vm3, %v928_v33, %v3350_v57  ;;  %3351 = vst [vmem:[#allocation23_spill] sm:$0xff] %v2558_v9  ;;  %v2569_v57 = vmul.f32 %v2036_v55, %v2136_v2  ;;  %v405_v33 = vstv %s2470_s5  ;;  %v2575_v19 = vsel %vm871_vm3, %v960_v28, %v3313_v61  ;;  %s2973_s5 = sld [smem:[#allocation2 + $0x31]] }
  0xec   :  { %v3314_v60 = vrot.slane %v2558_v9, 4  ;;  %v992_v25 = vrot.slane %v984_v40, 4  ;;  %v709_v17 = vstv %s2500_s8  ;;  %v862_v32 = vstv %s2502_s9  ;;  %s1651_s8 = sld [smem:[#allocation2 + $0x22]]  ;;  %s1656_s9 = sld [smem:[#allocation2 + $0x27]] }
  0xed   :  { %3352 = vst [vmem:[#allocation24_spill] sm:$0xff] %v2569_v57  ;;  %448 = vrot.lane.b32.xlu1 %v2221_v10, %s1751_s7  ;;  %v3319_v0 = vrot.slane %v2569_v57, 4  ;;  %v2592_v18 = vmul.f32 %v405_v33, %v2126_v36  ;;  %v2595_v28 = vmul.f32 %v405_v33, %v2136_v2  ;;  %v408_v10 = vmul.f32 %v405_v33, %v2021_v45 }
  0xee   :  { %444 = vrot.lane.b32.xlu0 %v2228_v59, %s1751_s7  ;;  %v2589_v55 = vsel %vm871_vm3, %v995_v47, %v3314_v60  ;;  %v406_v59 = vmul.f32 %v405_v33, %v2030_v29  ;;  %v560_v61 = vmul.f32 %v557_v63, %v2021_v45  ;;  %v2606_v47 = vmul.f32 %v557_v63, %v2126_v36 }
  0xef   :  { %3353 = vst [vmem:[#allocation25_spill] sm:$0xff] %v2592_v18  ;;  %3354 = vst [vmem:[#allocation26_spill] sm:$0xff] %v2595_v28  ;;  %v2601_v40 = vsel %vm871_vm3, %v992_v25, %v3319_v0  ;;  %v3321_v60 = vrot.slane %v2592_v18, 1  ;;  %v417_v52 = vrot.slane %v408_v10, 1  ;;  %v558_v12 = vmul.f32 %v557_v63, %v2030_v29 }
  0xf0   :  { %v414_v57 = vrot.slane %v406_v59, 1  ;;  %v569_v25 = vrot.slane %v560_v61, 2  ;;  %v3324_v0 = vrot.slane %v2606_v47, 2  ;;  %v2615_v33 = vmul.f32 %v557_v63, %v2136_v2 }
  0xf1   :  { %480 = vrot.lane.b32.xlu1 %v2235_v48, %s1750_s6  ;;  %v2622_v9 = vsel %vm116_vm0, %v417_v52, %v3321_v60  ;;  %v566_v10 = vrot.slane %v558_v12, 2  ;;  %v712_v39 = vmul.f32 %v709_v17, %v2021_v45  ;;  %v2626_v48 = vmul.f32 %v709_v17, %v2126_v36 }
  0xf2   :  { %3355 = vst [vmem:[#allocation27_spill] sm:$0xff] %v2615_v33  ;;  %476 = vrot.lane.b32.xlu0 %v2242_v42, %s1750_s6  ;;  %v3357_v61 = vrot.slane %v2595_v28, 1  ;;  %v2636_v42 = vsel %vm205_vm1, %v569_v25, %v3324_v0  ;;  %v3325_v63 = vrot.slane %v2615_v33, 2  ;;  %v710_v52 = vmul.f32 %v709_v17, %v2030_v29 }
  0xf3   :  { %3356 = vst [vmem:[#allocation28_spill] sm:$0xff] %v2626_v48  ;;  %v722_v12 = vrot.slane %v712_v39, 3  ;;  %v723_v60 = vrot.slane %v2626_v48, 3  ;;  %v2642_v18 = vmul.f32 %v709_v17, %v2136_v2  ;;  %v865_v28 = vmul.f32 %v862_v32, %v2021_v45 }
  0xf4   :  { %v2631_v59 = vsel %vm116_vm0, %v414_v57, %v3357_v61  ;;  %v2650_v57 = vsel %vm205_vm1, %v566_v10, %v3325_v63  ;;  %v2653_v25 = vmul.f32 %v862_v32, %v2126_v36  ;;  %v863_v39 = vmul.f32 %v862_v32, %v2030_v29 }
  0xf5   :  { %512 = vrot.lane.b32.xlu1 %v2250_v49, %s1752_s30  ;;  %v2661_v17 = vsel %vm718_vm2, %v722_v12, %v723_v60  ;;  %v719_v61 = vrot.slane %v710_v52, 3  ;;  %v720_v49 = vrot.slane %v2642_v18, 3  ;;  %v2665_v0 = vmul.f32 %v862_v32, %v2136_v2 }
  0xf6   :  { %508 = vrot.lane.b32.xlu0 %v2257_v50, %s1752_s30  ;;  %v875_v10 = vrot.slane %v865_v28, 4  ;;  %v876_v63 = vrot.slane %v2653_v25, 4  ;;  %v872_v50 = vrot.slane %v863_v39, 4  ;;  %v3372_v28 = vld [vmem:[#allocation12_spill] sm:$0xff]  ;;  %v3035_v25 = vstv %s2967_s29 }
  0xf7   :  { %v2671_v33 = vsel %vm718_vm2, %v719_v61, %v720_v49  ;;  %v873_v48 = vrot.slane %v2665_v0, 4 }
  0xf8   :  { %v2679_v52 = vsel %vm871_vm3, %v875_v10, %v876_v63 }
  0xf9   :  { %544 = vrot.lane.b32.xlu1 %v2262_v44, %s1753_s4  ;;  %v2686_v32 = vsel %vm871_vm3, %v872_v50, %v873_v48  ;;  %v3378_v50 = vld [vmem:[#allocation15_spill] sm:$0xff] }
  0xfa   :  { %540 = vrot.lane.b32.xlu0 %v2267_v5, %s1753_s4 }
  0xfd   :  { %600 = vrot.lane.b32.xlu1 %v2313_v34, %s1751_s7  ;;  %v3358_v34 = vrot.slane %v2201_v4, 1  ;;  %v3360_v4 = vrot.slane %v2271_v54, 2 }
  0xfe   :  { %596 = vrot.lane.b32.xlu0 %v2320_v8, %s1751_s7  ;;  %v3362_v8 = vrot.slane %v2279_v7, 2  ;;  %v3365_v7 = vrot.slane %v2291_v27, 2 }
 0x101   :  { %632 = vrot.lane.b32.xlu1 %v2327_v38, %s1750_s6  ;;  %v3359_v38 = vrot.slane %v2205_v31, 1  ;;  %v3361_v31 = vrot.slane %v2275_v62, 2 }
 0x102   :  { %628 = vrot.lane.b32.xlu0 %v2334_v56, %s1750_s6  ;;  %v3363_v56 = vrot.slane %v2283_v53, 2 }
 0x105   :  { %664 = vrot.lane.b32.xlu1 %v2341_v37, %s1752_s30 }
 0x106   :  { %660 = vrot.lane.b32.xlu0 %v2346_v22, %s1752_s30 }
 0x109   :  { %696 = vrot.lane.b32.xlu1 %v2351_v43, %s1753_s4  ;;  %v3364_v43 = vrot.slane %v2287_v58, 2 }
 0x10a   :  { %692 = vrot.lane.b32.xlu0 %v2389_v13, %s1753_s4 }
 0x10d   :  { %753 = vrot.lane.b32.xlu1 %v2398_v21, %s1751_s7 }
 0x10e   :  { %749 = vrot.lane.b32.xlu0 %v2408_v35, %s1751_s7 }
 0x111   :  { %785 = vrot.lane.b32.xlu1 %v2413_v51, %s1750_s6 }
 0x112   :  { %781 = vrot.lane.b32.xlu0 %v2424_v23, %s1750_s6 }
 0x115   :  { %817 = vrot.lane.b32.xlu1 %v2455_v16, %s1752_s30  ;;  %v2748_v16 = vstv %s1625_s10  ;;  %s1678_s10 = sld [smem:[#allocation2 + $0x3c]] }
 0x116   :  { %813 = vrot.lane.b32.xlu0 %v2465_v26, %s1752_s30  ;;  %v294_v54 = vmul.f32 %v2748_v16, %v2021_v45  ;;  %v292_v62 = vmul.f32 %v2748_v16, %v2030_v29  ;;  %v3366_v45 = vrot.slane %v2296_v11, 2  ;;  %v3367_v29 = vrot.slane %v2355_v24, 2 }
 0x119   :  { %849 = vrot.lane.b32.xlu1 %v2475_v1, %s1753_s4 }
 0x11a   :  { %845 = vrot.lane.b32.xlu0 %v2492_v15, %s1753_s4  ;;  %v3368_v15 = vrot.slane %v2361_v14, 3  ;;  %v3373_v14 = vrot.slane %v3372_v28, 3 }
 0x11d   :  { %906 = vrot.lane.b32.xlu1 %v2510_v6, %s1751_s7  ;;  %v3369_v6 = vrot.slane %v2371_v20, 3 }
 0x11e   :  { %902 = vrot.lane.b32.xlu0 %v2527_v41, %s1751_s7 }
 0x121   :  { %938 = vrot.lane.b32.xlu1 %v2542_v46, %s1750_s6 }
 0x122   :  { %934 = vrot.lane.b32.xlu0 %v2553_v3, %s1750_s6 }
 0x125   :  { %546 = vrot.lane.b32.xlu1 %v3358_v34, %s1753_s4  ;;  %v3379_v34 = vrot.slane %v3378_v50, 3 }
 0x126   :  { %542 = vrot.lane.b32.xlu0 %v3359_v38, %s1753_s4  ;;  %v3380_v38 = vld [vmem:[#allocation16_spill] sm:$0xff] }
 0x129   :  { %970 = vrot.lane.b32.xlu1 %v2563_v30, %s1752_s30 }
 0x12a   :  { %966 = vrot.lane.b32.xlu0 %v2575_v19, %s1752_s30  ;;  %v3370_v19 = vld [vmem:[#allocation11_spill] sm:$0xff] }
 0x12d   :  { %1002 = vrot.lane.b32.xlu1 %v2589_v55, %s1753_s4  ;;  %v3371_v55 = vrot.slane %v3370_v19, 3 }
 0x12e   :  { %998 = vrot.lane.b32.xlu0 %v2601_v40, %s1753_s4 }
 0x130   :  { %v315_v44 = vpop.permute.xlu1 %314 }
 0x131   :  { %602 = vrot.lane.b32.xlu1 %v3360_v4, %s1751_s7  ;;  %v311_v5 = vpop.permute.xlu0 %310  ;;  %v324_v13 = vadd.f32 %v315_v44, %v294_v54  ;;  %v3381_v4 = vrot.slane %v3380_v38, 3 }
 0x132   :  { %598 = vrot.lane.b32.xlu0 %v3361_v31, %s1751_s7  ;;  %v322_v21 = vadd.f32 %v311_v5, %v292_v62  ;;  %v3382_v5 = vld [vmem:[#allocation17_spill] sm:$0xff]  ;;  %v3386_v62 = vld [vmem:[#allocation19_spill] sm:$0xff] }
 0x134   :  { %v341_v37 = vpop.permute.xlu1 %340 }
 0x135   :  { %634 = vrot.lane.b32.xlu1 %v3362_v8, %s1750_s6  ;;  %v337_v22 = vpop.permute.xlu0 %336  ;;  %v350_v35 = vadd.f32 %v341_v37, %v324_v13  ;;  %v3383_v8 = vrot.slane %v3382_v5, 4  ;;  %v3388_v13 = vld [vmem:[#allocation20_spill] sm:$0xff] }
 0x136   :  { %630 = vrot.lane.b32.xlu0 %v3363_v56, %s1750_s6  ;;  %v348_v23 = vadd.f32 %v337_v22, %v322_v21  ;;  %v3384_v56 = vld [vmem:[#allocation18_spill] sm:$0xff] }
 0x137   :  { %v3385_v37 = vrot.slane %v3384_v56, 4 }
 0x138   :  { %v367_v53 = vpop.permute.xlu1 %366 }
 0x139   :  { %666 = vrot.lane.b32.xlu1 %v3364_v43, %s1752_s30  ;;  %v363_v51 = vpop.permute.xlu0 %362  ;;  %v376_v30 = vadd.f32 %v367_v53, %v350_v35  ;;  %v3387_v43 = vrot.slane %v3386_v62, 4  ;;  %v3390_v35 = vld [vmem:[#allocation21_spill] sm:$0xff] }
 0x13a   :  { %662 = vrot.lane.b32.xlu0 %v3365_v7, %s1752_s30  ;;  %v374_v58 = vadd.f32 %v363_v51, %v348_v23  ;;  %v3389_v7 = vrot.slane %v3388_v13, 4  ;;  %v3391_v51 = vrot.slane %v3390_v35, 4  ;;  %v3392_v23 = vld [vmem:[#allocation22_spill] sm:$0xff] }
 0x13c   :  { %v393_v26 = vpop.permute.xlu1 %392 }
 0x13d   :  { %698 = vrot.lane.b32.xlu1 %v3366_v45, %s1753_s4  ;;  %v402_v1 = vadd.f32 %v393_v26, %v376_v30  ;;  %v389_v46 = vpop.permute.xlu0 %388  ;;  %v3393_v45 = vrot.slane %v3392_v23, 4 }
 0x13e   :  { %694 = vrot.lane.b32.xlu0 %v3367_v29, %s1753_s4  ;;  %v400_v27 = vadd.f32 %v389_v46, %v374_v58  ;;  %v3394_v58 = vld [vmem:[#allocation23_spill] sm:$0xff] }
 0x13f   :  { %v426_v11 = vadd.f32 %v2622_v9, %v402_v1  ;;  %v3374_v9 = vld [vmem:[#allocation13_spill] sm:$0xff]  ;;  %v3395_v26 = vrot.slane %v3394_v58, 4  ;;  %v3396_v1 = vld [vmem:[#allocation24_spill] sm:$0xff] }
 0x140   :  { %v2779_v41 = vpop.permute.xlu1 %316  ;;  %v424_v24 = vadd.f32 %v2631_v59, %v400_v27  ;;  %v3375_v12 = vrot.slane %v3374_v9, 3  ;;  %v3376_v59 = vld [vmem:[#allocation14_spill] sm:$0xff]  ;;  %v3397_v46 = vrot.slane %v3396_v1, 4 }
 0x141   :  { %755 = vrot.lane.b32.xlu1 %v3368_v15, %s1751_s7  ;;  %v2782_v3 = vpop.permute.xlu0 %312  ;;  %v3377_v39 = vrot.slane %v3376_v59, 3 }
 0x142   :  { %751 = vrot.lane.b32.xlu0 %v3369_v6, %s1751_s7 }
 0x144   :  { %v2790_v40 = vpop.permute.xlu1 %342 }
 0x145   :  { %787 = vrot.lane.b32.xlu1 %v3371_v55, %s1750_s6  ;;  %v2792_v20 = vpop.permute.xlu0 %338 }
 0x146   :  { %783 = vrot.lane.b32.xlu0 %v3373_v14, %s1750_s6 }
 0x148   :  { %v2800_v61 = vpop.permute.xlu1 %368 }
 0x149   :  { %819 = vrot.lane.b32.xlu1 %v3375_v12, %s1752_s30  ;;  %v2802_v10 = vpop.permute.xlu0 %364 }
 0x14a   :  { %815 = vrot.lane.b32.xlu0 %v3377_v39, %s1752_s30 }
 0x14c   :  { %v2810_v31 = vpop.permute.xlu1 %394 }
 0x14d   :  { %851 = vrot.lane.b32.xlu1 %v3379_v34, %s1753_s4  ;;  %v2812_v44 = vpop.permute.xlu0 %390 }
 0x14e   :  { %847 = vrot.lane.b32.xlu0 %v3381_v4, %s1753_s4 }
 0x150   :  { %v2820_v54 = vpop.permute.xlu1 %450 }
 0x151   :  { %908 = vrot.lane.b32.xlu1 %v3383_v8, %s1751_s7  ;;  %v2822_v22 = vpop.permute.xlu0 %446 }
 0x152   :  { %904 = vrot.lane.b32.xlu0 %v3385_v37, %s1751_s7 }
 0x155   :  { %940 = vrot.lane.b32.xlu1 %v3387_v43, %s1750_s6 }
 0x156   :  { %936 = vrot.lane.b32.xlu0 %v3389_v7, %s1750_s6 }
 0x157   :  { %v2830_v21 = vpop.permute.xlu1 %482 }
 0x158   :  { %v2832_v53 = vpop.permute.xlu0 %478 }
 0x159   :  { %972 = vrot.lane.b32.xlu1 %v3391_v51, %s1752_s30 }
 0x15a   :  { %968 = vrot.lane.b32.xlu0 %v3393_v45, %s1752_s30 }
 0x15b   :  { %v2840_v30 = vpop.permute.xlu1 %514 }
 0x15c   :  { %v2842_v29 = vpop.permute.xlu0 %510 }
 0x15d   :  { %1004 = vrot.lane.b32.xlu1 %v3395_v26, %s1753_s4 }
 0x15e   :  { %1000 = vrot.lane.b32.xlu0 %v3397_v46, %s1753_s4 }
 0x15f   :  { %v449_v27 = vpop.permute.xlu1 %448 }
 0x160   :  { %v445_v15 = vpop.permute.xlu0 %444  ;;  %v458_v55 = vadd.f32 %v449_v27, %v426_v11 }
 0x161   :  { %v456_v28 = vadd.f32 %v445_v15, %v424_v24 }
 0x163   :  { %v481_v6 = vpop.permute.xlu1 %480 }
 0x164   :  { %v477_v19 = vpop.permute.xlu0 %476  ;;  %v490_v9 = vadd.f32 %v481_v6, %v458_v55 }
 0x165   :  { %v488_v59 = vadd.f32 %v477_v19, %v456_v28 }
 0x167   :  { %v513_v14 = vpop.permute.xlu1 %512 }
 0x168   :  { %v509_v12 = vpop.permute.xlu0 %508  ;;  %v522_v39 = vadd.f32 %v513_v14, %v490_v9 }
 0x169   :  { %v520_v50 = vadd.f32 %v509_v12, %v488_v59 }
 0x16b   :  { %v545_v34 = vpop.permute.xlu1 %544 }
 0x16c   :  { %v554_v38 = vadd.f32 %v545_v34, %v522_v39  ;;  %v541_v4 = vpop.permute.xlu0 %540 }
 0x16d   :  { %v552_v5 = vadd.f32 %v541_v4, %v520_v50 }
 0x16e   :  { %v578_v8 = vadd.f32 %v2636_v42, %v554_v38 }
 0x16f   :  { %v601_v56 = vpop.permute.xlu1 %600  ;;  %v576_v37 = vadd.f32 %v2650_v57, %v552_v5 }
 0x170   :  { %v597_v62 = vpop.permute.xlu0 %596  ;;  %v610_v11 = vadd.f32 %v601_v56, %v578_v8 }
 0x171   :  { %v608_v24 = vadd.f32 %v597_v62, %v576_v37  ;;  %v295_v62 = vmul.f32 %v2748_v16, %v2126_v36 }
 0x173   :  { %v633_v43 = vpop.permute.xlu1 %632 }
 0x174   :  { %v629_v13 = vpop.permute.xlu0 %628  ;;  %v642_v35 = vadd.f32 %v633_v43, %v610_v11  ;;  %v293_v43 = vmul.f32 %v2748_v16, %v2136_v2  ;;  %v325_v11 = vadd.f32 %v2779_v41, %v295_v62 }
 0x175   :  { %v640_v23 = vadd.f32 %v629_v13, %v608_v24 }
 0x177   :  { %v665_v7 = vpop.permute.xlu1 %664 }
 0x178   :  { %v661_v51 = vpop.permute.xlu0 %660  ;;  %v674_v45 = vadd.f32 %v665_v7, %v642_v35  ;;  %v323_v7 = vadd.f32 %v2782_v3, %v293_v43  ;;  %v351_v35 = vadd.f32 %v2790_v40, %v325_v11  ;;  %v3403_v11 = vld [vmem:[#allocation27_spill] sm:$0xff] }
 0x179   :  { %v672_v58 = vadd.f32 %v661_v51, %v640_v23 }
 0x17b   :  { %v697_v26 = vpop.permute.xlu1 %696 }
 0x17c   :  { %v706_v1 = vadd.f32 %v697_v26, %v674_v45  ;;  %v693_v46 = vpop.permute.xlu0 %692 }
 0x17d   :  { %v704_v27 = vadd.f32 %v693_v46, %v672_v58 }
 0x17e   :  { %v731_v42 = vadd.f32 %v2661_v17, %v706_v1 }
 0x17f   :  { %v754_v15 = vpop.permute.xlu1 %753  ;;  %v729_v57 = vadd.f32 %v2671_v33, %v704_v27  ;;  %v3400_v27 = vld [vmem:[#allocation26_spill] sm:$0xff] }
 0x180   :  { %v750_v6 = vpop.permute.xlu0 %749  ;;  %v763_v28 = vadd.f32 %v754_v15, %v731_v42  ;;  %v3401_v42 = vrot.slane %v3400_v27, 1 }
 0x181   :  { %v761_v14 = vadd.f32 %v750_v6, %v729_v57  ;;  %v2874_v57 = vstv %s1650_s11  ;;  %s1679_s11 = sld [smem:[#allocation2 + $0x3d]] }
 0x183   :  { %v786_v19 = vpop.permute.xlu1 %785 }
 0x184   :  { %v782_v55 = vpop.permute.xlu0 %781  ;;  %v795_v12 = vadd.f32 %v786_v19, %v763_v28 }
 0x185   :  { %v793_v39 = vadd.f32 %v782_v55, %v761_v14  ;;  %v1027_v55 = vstv %s1652_s12  ;;  %s1681_s12 = sld [smem:[#allocation2 + $0x3f]] }
 0x187   :  { %v818_v9 = vpop.permute.xlu1 %817 }
 0x188   :  { %v814_v59 = vpop.permute.xlu0 %813  ;;  %v827_v50 = vadd.f32 %v818_v9, %v795_v12 }
 0x189   :  { %v825_v34 = vadd.f32 %v814_v59, %v793_v39 }
 0x18b   :  { %v850_v38 = vpop.permute.xlu1 %849 }
 0x18c   :  { %v859_v4 = vadd.f32 %v850_v38, %v827_v50  ;;  %v846_v5 = vpop.permute.xlu0 %845 }
 0x18d   :  { %v857_v8 = vadd.f32 %v846_v5, %v825_v34 }
 0x18e   :  { %v884_v17 = vadd.f32 %v2679_v52, %v859_v4  ;;  %v349_v52 = vadd.f32 %v2792_v20, %v323_v7  ;;  %v3398_v20 = vld [vmem:[#allocation25_spill] sm:$0xff] }
 0x18f   :  { %v907_v56 = vpop.permute.xlu1 %906  ;;  %v882_v33 = vadd.f32 %v2686_v32, %v857_v8  ;;  %v377_v32 = vadd.f32 %v2800_v61, %v351_v35  ;;  %v3399_v1 = vrot.slane %v3398_v20, 1 }
 0x190   :  { %v903_v37 = vpop.permute.xlu0 %902  ;;  %v375_v36 = vadd.f32 %v2802_v10, %v349_v52  ;;  %v916_v16 = vadd.f32 %v907_v56, %v884_v17  ;;  %v1069_v52 = vstv %s2891_s15  ;;  %s1685_s15 = sld [smem:[#allocation2 + $0x43]] }
 0x191   :  { %v403_v2 = vadd.f32 %v2810_v31, %v377_v32  ;;  %v914_v45 = vadd.f32 %v903_v37, %v882_v33  ;;  %v1055_v37 = vstv %s2876_s14  ;;  %s1684_s14 = sld [smem:[#allocation2 + $0x42]] }
 0x192   :  { %v401_v41 = vadd.f32 %v2812_v44, %v375_v36 }
 0x193   :  { %v939_v13 = vpop.permute.xlu1 %938  ;;  %v427_v46 = vadd.f32 %v3399_v1, %v403_v2 }
 0x194   :  { %v935_v24 = vpop.permute.xlu0 %934  ;;  %v948_v3 = vadd.f32 %v939_v13, %v916_v16  ;;  %v425_v10 = vadd.f32 %v3401_v42, %v401_v41 }
 0x195   :  { %v946_v40 = vadd.f32 %v935_v24, %v914_v45  ;;  %v459_v28 = vadd.f32 %v2820_v54, %v427_v46  ;;  %v1041_v54 = vstv %s2868_s13  ;;  %v3404_v24 = vrot.slane %v3403_v11, 2  ;;  %s1682_s13 = sld [smem:[#allocation2 + $0x40]] }
 0x196   :  { %v457_v9 = vadd.f32 %v2822_v22, %v425_v10  ;;  %v2979_v11 = vstv %s2943_s22 }
 0x197   :  { %v547_v51 = vpop.permute.xlu1 %546  ;;  %v491_v39 = vadd.f32 %v2830_v21, %v459_v28 }
 0x198   :  { %v543_v23 = vpop.permute.xlu0 %542  ;;  %v489_v38 = vadd.f32 %v2832_v53, %v457_v9 }
 0x199   :  { %v523_v22 = vadd.f32 %v2840_v30, %v491_v39 }
 0x19a   :  { %v521_v5 = vadd.f32 %v2842_v29, %v489_v38  ;;  %v3402_v29 = vrot.slane %v2606_v47, 2  ;;  %v1143_v38 = vstv %s2923_s19 }
 0x19b   :  { %v971_v58 = vpop.permute.xlu1 %970  ;;  %v555_v8 = vadd.f32 %v547_v51, %v523_v22  ;;  %v1095_v51 = vstv %s2893_s16  ;;  %s1677_s16 = sld [smem:[#allocation2 + $0x3b]] }
 0x19c   :  { %v967_v26 = vpop.permute.xlu0 %966  ;;  %v980_v61 = vadd.f32 %v971_v58, %v948_v3  ;;  %v553_v56 = vadd.f32 %v543_v23, %v521_v5 }
 0x19d   :  { %v978_v15 = vadd.f32 %v967_v26, %v946_v40  ;;  %v579_v62 = vadd.f32 %v3402_v29, %v555_v8  ;;  %v1111_v26 = vstv %s2902_s17  ;;  %v1171_v8 = vstv %s2930_s20  ;;  %s1680_s17 = sld [smem:[#allocation2 + $0x3e]] }
 0x19e   :  { %v577_v7 = vadd.f32 %v3404_v24, %v553_v56 }
 0x19f   :  { %v1003_v31 = vpop.permute.xlu1 %1002 }
 0x1a0   :  { %v1012_v44 = vadd.f32 %v1003_v31, %v980_v61  ;;  %v999_v6 = vpop.permute.xlu0 %998 }
 0x1a1   :  { %v1010_v19 = vadd.f32 %v999_v6, %v978_v15 }
 0x1a2   :  { %v2880_v14 = vadd.f32 %v2874_v57, %v1012_v44  ;;  %v1127_v44 = vstv %s2914_s18  ;;  %s1683_s18 = sld [smem:[#allocation2 + $0x41]] }
 0x1a3   :  { %v2884_v12 = vadd.f32 %v2874_v57, %v1010_v19  ;;  %v603_v59 = vpop.permute.xlu1 %602  ;;  %v3041_v19 = vstv %s2975_s2 }
 0x1a4   :  { %v599_v50 = vpop.permute.xlu0 %598  ;;  %v1029_v34 = vmul.f32 %v1027_v55, %v2880_v14  ;;  %v1043_v17 = vmul.f32 %v1041_v54, %v2880_v14  ;;  %v1057_v13 = vmul.f32 %v1055_v37, %v2880_v14  ;;  %v611_v32 = vadd.f32 %v603_v59, %v579_v62 }
 0x1a5   :  { %v1028_v4 = vmul.f32 %v1027_v55, %v2884_v12  ;;  %v1042_v33 = vmul.f32 %v1041_v54, %v2884_v12  ;;  %v1056_v35 = vmul.f32 %v1055_v37, %v2884_v12  ;;  %v609_v23 = vadd.f32 %v599_v50, %v577_v7 }
 0x1a6   :  { %1034 = vrot.lane.b32.xlu1 %v1029_v34, %s1751_s7  ;;  %v1071_v16 = vmul.f32 %v1069_v52, %v2880_v14  ;;  %v1097_v41 = vmul.f32 %v1095_v51, %v2880_v14  ;;  %v1070_v58 = vmul.f32 %v1069_v52, %v2884_v12  ;;  %v1096_v3 = vmul.f32 %v1095_v51, %v2884_v12 }
 0x1a7   :  { %1032 = vrot.lane.b32.xlu0 %v1028_v4, %s1751_s7  ;;  %v635_v21 = vpop.permute.xlu1 %634  ;;  %v1113_v42 = vmul.f32 %v1111_v26, %v2880_v14  ;;  %v1112_v31 = vmul.f32 %v1111_v26, %v2884_v12  ;;  %v1129_v59 = vmul.f32 %v1127_v44, %v2880_v14  ;;  %v1128_v34 = vmul.f32 %v1127_v44, %v2884_v12 }
 0x1a8   :  { %v631_v53 = vpop.permute.xlu0 %630  ;;  %v643_v36 = vadd.f32 %v635_v21, %v611_v32  ;;  %v1101_v27 = vrot.slane %v1097_v41, 1  ;;  %v1100_v15 = vrot.slane %v1096_v3, 1  ;;  %v1145_v54 = vmul.f32 %v1143_v38, %v2880_v14 }
 0x1a9   :  { %v641_v45 = vadd.f32 %v631_v53, %v609_v23  ;;  %v1117_v9 = vrot.slane %v1113_v42, 1  ;;  %v1116_v50 = vrot.slane %v1112_v31, 1  ;;  %v1133_v4 = vrot.slane %v1129_v59, 1 }
 0x1aa   :  { %1048 = vrot.lane.b32.xlu1 %v1043_v17, %s1750_s6  ;;  %v1132_v5 = vrot.slane %v1128_v34, 1  ;;  %v1144_v21 = vmul.f32 %v1143_v38, %v2884_v12  ;;  %v1203_v37 = vstv %s2936_s1  ;;  %v2983_v52 = vstv %s2949_s23 }
 0x1ab   :  { %1046 = vrot.lane.b32.xlu0 %v1042_v33, %s1750_s6  ;;  %v667_v30 = vpop.permute.xlu1 %666  ;;  %v1187_v33 = vstv %s2933_s0  ;;  %v2987_v32 = vstv %s2951_s24  ;;  %v2990_v23 = vstv %s2954_s25  ;;  %v3029_v31 = vmul.f32 %v2983_v52, %v2884_v12 }
 0x1ac   :  { %v663_v43 = vpop.permute.xlu0 %662  ;;  %v675_v40 = vadd.f32 %v667_v30, %v643_v36  ;;  %v1219_v30 = vstv %s2938_s21  ;;  %v1148_v7 = vrot.slane %v1144_v21, 1  ;;  %v2998_v41 = vstv %s2959_s27 }
 0x1ad   :  { %v673_v20 = vadd.f32 %v663_v43, %v641_v45  ;;  %v1149_v43 = vrot.slane %v1145_v54, 1  ;;  %v3001_v45 = vstv %s2961_s28  ;;  %v1188_v26 = vmul.f32 %v1187_v33, %v2884_v12 }
 0x1ae   :  { %1062 = vrot.lane.b32.xlu1 %v1057_v13, %s1752_s30  ;;  %v1173_v13 = vmul.f32 %v1171_v8, %v2880_v14  ;;  %v3063_v21 = vmul.f32 %v2990_v23, %v2884_v12 }
 0x1af   :  { %1060 = vrot.lane.b32.xlu0 %v1056_v35, %s1752_s30  ;;  %v699_v47 = vpop.permute.xlu1 %698  ;;  %v1172_v35 = vmul.f32 %v1171_v8, %v2884_v12 }
 0x1b0   :  { %v695_v2 = vpop.permute.xlu0 %694  ;;  %v707_v46 = vadd.f32 %v699_v47, %v675_v40  ;;  %v2993_v47 = vstv %s2956_s26  ;;  %v1177_v3 = vrot.slane %v1173_v13, 2  ;;  %v1205_v40 = vmul.f32 %v1203_v37, %v2880_v14 }
 0x1b1   :  { %v705_v10 = vadd.f32 %v695_v2, %v673_v20  ;;  %v1204_v20 = vmul.f32 %v1203_v37, %v2884_v12 }
 0x1b2   :  { %1076 = vrot.lane.b32.xlu1 %v1071_v16, %s1753_s4  ;;  %v732_v55 = vadd.f32 %v723_v60, %v707_v46  ;;  %v1189_v16 = vmul.f32 %v1187_v33, %v2880_v14  ;;  %v3007_v46 = vmul.f32 %v1219_v30, %v2880_v14  ;;  %v1209_v59 = vrot.slane %v1205_v40, 2 }
 0x1b3   :  { %1074 = vrot.lane.b32.xlu0 %v1070_v58, %s1753_s4  ;;  %v756_v1 = vpop.permute.xlu1 %755  ;;  %v730_v39 = vadd.f32 %v720_v49, %v705_v10  ;;  %v3021_v10 = vmul.f32 %v2979_v11, %v2884_v12  ;;  %v3075_v33 = vmul.f32 %v2998_v41, %v2880_v14 }
 0x1b4   :  { %v752_v61 = vpop.permute.xlu0 %751  ;;  %v764_v18 = vadd.f32 %v756_v1, %v732_v55  ;;  %v1176_v1 = vrot.slane %v1172_v35, 2 }
 0x1b5   :  { %v762_v22 = vadd.f32 %v752_v61, %v730_v39  ;;  %v3010_v61 = vmul.f32 %v1219_v30, %v2884_v12  ;;  %v1208_v39 = vrot.slane %v1204_v20, 2  ;;  %v3079_v30 = vmul.f32 %v2998_v41, %v2884_v12 }
 0x1b6   :  { %1104 = vrot.lane.b32.xlu1 %v1101_v27, %s1751_s7  ;;  %v3014_v27 = vmul.f32 %v2979_v11, %v2880_v14  ;;  %v1407_v20 = vrot.slane %v3075_v33, 4 }
 0x1b7   :  { %1102 = vrot.lane.b32.xlu0 %v1100_v15, %s1751_s7  ;;  %v788_v6 = vpop.permute.xlu1 %787  ;;  %v3025_v15 = vmul.f32 %v2983_v52, %v2880_v14  ;;  %v1224_v34 = vrot.slane %v3010_v61, 2 }
 0x1b8   :  { %v784_v28 = vpop.permute.xlu0 %783  ;;  %v796_v53 = vadd.f32 %v788_v6, %v764_v18  ;;  %v3038_v6 = vstv %s2973_s5  ;;  %v1267_v0 = vrot.slane %v3014_v27, 3 }
 0x1b9   :  { %v794_v17 = vadd.f32 %v784_v28, %v762_v22  ;;  %v1193_v28 = vrot.slane %v1189_v16, 2  ;;  %v1291_v18 = vrot.slane %v3025_v15, 3  ;;  %v3057_v22 = vmul.f32 %v2987_v32, %v2884_v12 }
 0x1ba   :  { %1120 = vrot.lane.b32.xlu1 %v1117_v9, %s1750_s6  ;;  %v1192_v9 = vrot.slane %v1188_v26, 2  ;;  %v1336_v16 = vrot.slane %v3063_v21, 3 }
 0x1bb   :  { %1118 = vrot.lane.b32.xlu0 %v1116_v50, %s1750_s6  ;;  %v820_v60 = vpop.permute.xlu1 %819  ;;  %v1225_v50 = vrot.slane %v3007_v46, 2  ;;  %v1404_v46 = vrot.slane %v3079_v30, 4 }
 0x1bc   :  { %v816_v49 = vpop.permute.xlu0 %815  ;;  %v828_v29 = vadd.f32 %v820_v60, %v796_v53  ;;  %v1264_v60 = vrot.slane %v3021_v10, 3 }
 0x1bd   :  { %v826_v24 = vadd.f32 %v816_v49, %v794_v17  ;;  %v1288_v49 = vrot.slane %v3029_v31, 3  ;;  %v3067_v17 = vmul.f32 %v2993_v47, %v2880_v14 }
 0x1be   :  { %1136 = vrot.lane.b32.xlu1 %v1133_v4, %s1752_s30 }
 0x1bf   :  { %1134 = vrot.lane.b32.xlu0 %v1132_v5, %s1752_s30  ;;  %v852_v56 = vpop.permute.xlu1 %851  ;;  %v1330_v5 = vmul.f32 %v2990_v23, %v2880_v14  ;;  %v1383_v26 = vrot.slane %v3067_v17, 4 }
 0x1c0   :  { %v848_v62 = vpop.permute.xlu0 %847  ;;  %v860_v51 = vadd.f32 %v852_v56, %v828_v29  ;;  %v3071_v56 = vmul.f32 %v2993_v47, %v2884_v12  ;;  %v3083_v29 = vmul.f32 %v3001_v45, %v2880_v14 }
 0x1c1   :  { %v858_v36 = vadd.f32 %v848_v62, %v826_v24  ;;  %v3087_v62 = vmul.f32 %v3001_v45, %v2884_v12  ;;  %v3093_v24 = vmul.f32 %v3035_v25, %v2880_v14 }
 0x1c2   :  { %1152 = vrot.lane.b32.xlu1 %v1149_v43, %s1753_s4  ;;  %v885_v42 = vadd.f32 %v876_v63, %v860_v51  ;;  %v1380_v40 = vrot.slane %v3071_v56, 4  ;;  %v1431_v61 = vrot.slane %v3083_v29, 4 }
 0x1c3   :  { %1150 = vrot.lane.b32.xlu0 %v1148_v7, %s1753_s4  ;;  %v909_v2 = vpop.permute.xlu1 %908  ;;  %v883_v44 = vadd.f32 %v873_v48, %v858_v36  ;;  %v3048_v48 = vmul.f32 %v2987_v32, %v2880_v14  ;;  %v3097_v7 = vmul.f32 %v3035_v25, %v2884_v12  ;;  %v1312_v36 = vrot.slane %v3057_v22, 3 }
 0x1c4   :  { %v905_v58 = vpop.permute.xlu0 %904  ;;  %v917_v38 = vadd.f32 %v909_v2, %v885_v42  ;;  %v1339_v2 = vrot.slane %v1330_v5, 3  ;;  %v1428_v42 = vrot.slane %v3087_v62, 4 }
 0x1c5   :  { %v915_v4 = vadd.f32 %v905_v58, %v883_v44  ;;  %v1315_v13 = vrot.slane %v3048_v48, 3 }
 0x1c6   :  { %1180 = vrot.lane.b32.xlu1 %v1177_v3, %s1751_s7 }
 0x1c7   :  { %1178 = vrot.lane.b32.xlu0 %v1176_v1, %s1751_s7  ;;  %v941_v63 = vpop.permute.xlu1 %940 }
 0x1c8   :  { %v937_v55 = vpop.permute.xlu0 %936  ;;  %v949_v8 = vadd.f32 %v941_v63, %v917_v38  ;;  %v1455_v63 = vrot.slane %v3093_v24, 4 }
 0x1c9   :  { %v947_v37 = vadd.f32 %v937_v55, %v915_v4  ;;  %v1452_v55 = vrot.slane %v3097_v7, 4 }
 0x1ca   :  { %1196 = vrot.lane.b32.xlu1 %v1193_v28, %s1750_s6  ;;  %v3116_v28 = vmul.f32 %v3038_v6, %v2880_v14 }
 0x1cb   :  { %1194 = vrot.lane.b32.xlu0 %v1192_v9, %s1750_s6  ;;  %v973_v54 = vpop.permute.xlu1 %972 }
 0x1cc   :  { %v969_v53 = vpop.permute.xlu0 %968  ;;  %v981_v43 = vadd.f32 %v973_v54, %v949_v8 }
 0x1cd   :  { %v979_v35 = vadd.f32 %v969_v53, %v947_v37 }
 0x1ce   :  { %1212 = vrot.lane.b32.xlu1 %v1209_v59, %s1752_s30  ;;  %v3122_v59 = vmul.f32 %v3038_v6, %v2884_v12 }
 0x1cf   :  { %1210 = vrot.lane.b32.xlu0 %v1208_v39, %s1752_s30  ;;  %v1005_v51 = vpop.permute.xlu1 %1004  ;;  %v3126_v39 = vmul.f32 %v3041_v19, %v2880_v14 }
 0x1d0   :  { %v1013_v58 = vadd.f32 %v1005_v51, %v981_v43  ;;  %v1001_v3 = vpop.permute.xlu0 %1000 }
 0x1d1   :  { %v1011_v1 = vadd.f32 %v1001_v3, %v979_v35 }
 0x1d2   :  { %v3109_v44 = vadd.f32 %v2874_v57, %v1013_v58  ;;  %1228 = vrot.lane.b32.xlu1 %v1225_v50, %s1753_s4  ;;  %v3130_v50 = vmul.f32 %v3041_v19, %v2884_v12 }
 0x1d3   :  { %v1017_v9 = vadd.f32 %v2874_v57, %v1011_v1  ;;  %1226 = vrot.lane.b32.xlu0 %v1224_v34, %s1753_s4 }
 0x1d4   :  { %v1259_v48 = vmul.f32 %v2979_v11, %v3109_v44  ;;  %v1283_v57 = vmul.f32 %v2983_v52, %v3109_v44  ;;  %v1307_v34 = vmul.f32 %v2987_v32, %v3109_v44  ;;  %v1331_v38 = vmul.f32 %v2990_v23, %v3109_v44 }
 0x1d5   :  { %v1257_v4 = vmul.f32 %v2979_v11, %v1017_v9  ;;  %v1281_v54 = vmul.f32 %v2983_v52, %v1017_v9  ;;  %v1305_v22 = vmul.f32 %v2987_v32, %v1017_v9  ;;  %v1329_v5 = vmul.f32 %v2990_v23, %v1017_v9 }
 0x1d6   :  { %v1268_v21 = vrot.slane %v1259_v48, 3  ;;  %v1292_v8 = vrot.slane %v1283_v57, 3  ;;  %v1316_v53 = vrot.slane %v1307_v34, 3  ;;  %v1340_v17 = vrot.slane %v1331_v38, 3 }
 0x1d7   :  { %v1265_v56 = vrot.slane %v1257_v4, 3  ;;  %v1289_v33 = vrot.slane %v1281_v54, 3  ;;  %v1313_v37 = vrot.slane %v1305_v22, 3  ;;  %v1337_v30 = vrot.slane %v1329_v5, 3 }
 0x1d8   :  { %v1269_v29 = vsel %vm718_vm2, %v1267_v0, %v1268_v21  ;;  %v1293_v11 = vsel %vm718_vm2, %v1291_v18, %v1292_v8  ;;  %v1317_v52 = vsel %vm718_vm2, %v1315_v13, %v1316_v53  ;;  %v1341_v32 = vsel %vm718_vm2, %v1339_v2, %v1340_v17 }
 0x1d9   :  { %1272 = vrot.lane.b32.xlu1 %v1269_v29, %s1751_s7  ;;  %v1266_v23 = vsel %vm718_vm2, %v1264_v60, %v1265_v56  ;;  %v1290_v27 = vsel %vm718_vm2, %v1288_v49, %v1289_v33  ;;  %v1314_v0 = vsel %vm718_vm2, %v1312_v36, %v1313_v37  ;;  %v1338_v15 = vsel %vm718_vm2, %v1336_v16, %v1337_v30 }
 0x1da   :  { %1270 = vrot.lane.b32.xlu0 %v1266_v23, %s1751_s7  ;;  %v1375_v18 = vmul.f32 %v2993_v47, %v3109_v44  ;;  %v1373_v62 = vmul.f32 %v2993_v47, %v1017_v9  ;;  %v1399_v10 = vmul.f32 %v2998_v41, %v3109_v44  ;;  %v1397_v60 = vmul.f32 %v2998_v41, %v1017_v9 }
 0x1db   :  { %v1423_v31 = vmul.f32 %v3001_v45, %v3109_v44  ;;  %v1421_v49 = vmul.f32 %v3001_v45, %v1017_v9  ;;  %v1447_v43 = vmul.f32 %v3035_v25, %v3109_v44  ;;  %v1445_v13 = vmul.f32 %v3035_v25, %v1017_v9 }
 0x1dc   :  { %v1384_v24 = vrot.slane %v1375_v18, 4  ;;  %v1381_v7 = vrot.slane %v1373_v62, 4  ;;  %v1408_v35 = vrot.slane %v1399_v10, 4  ;;  %v1405_v51 = vrot.slane %v1397_v60, 4 }
 0x1dd   :  { %1296 = vrot.lane.b32.xlu1 %v1293_v11, %s1750_s6  ;;  %v1432_v47 = vrot.slane %v1423_v31, 4  ;;  %v1429_v36 = vrot.slane %v1421_v49, 4  ;;  %v1456_v2 = vrot.slane %v1447_v43, 4  ;;  %v1453_v41 = vrot.slane %v1445_v13, 4 }
 0x1de   :  { %1294 = vrot.lane.b32.xlu0 %v1290_v27, %s1750_s6  ;;  %v1385_v16 = vsel %vm871_vm3, %v1383_v26, %v1384_v24  ;;  %v1382_v45 = vsel %vm871_vm3, %v1380_v40, %v1381_v7  ;;  %v1409_v58 = vsel %vm871_vm3, %v1407_v20, %v1408_v35  ;;  %v1406_v25 = vsel %vm871_vm3, %v1404_v46, %v1405_v51 }
 0x1df   :  { %v1433_v3 = vsel %vm871_vm3, %v1431_v61, %v1432_v47  ;;  %v1430_v1 = vsel %vm871_vm3, %v1428_v42, %v1429_v36  ;;  %v1457_v48 = vsel %vm871_vm3, %v1455_v63, %v1456_v2  ;;  %v1454_v57 = vsel %vm871_vm3, %v1452_v55, %v1453_v41 }
 0x1e0   :  { %v1239_v34 = vmul.f32 %v3038_v6, %v3109_v44  ;;  %v1237_v38 = vmul.f32 %v3038_v6, %v1017_v9  ;;  %v1355_v26 = vmul.f32 %v3041_v19, %v3109_v44  ;;  %v1353_v40 = vmul.f32 %v3041_v19, %v1017_v9 }
 0x1e1   :  { %1320 = vrot.lane.b32.xlu1 %v1317_v52, %s1752_s30  ;;  %v1247_v20 = vrot.slane %v3116_v28, 3  ;;  %v1244_v46 = vrot.slane %v3122_v59, 3  ;;  %v1363_v61 = vrot.slane %v3126_v39, 4  ;;  %v1360_v42 = vrot.slane %v3130_v50, 4 }
 0x1e2   :  { %1318 = vrot.lane.b32.xlu0 %v1314_v0, %s1752_s30  ;;  %v1248_v63 = vrot.slane %v1239_v34, 3  ;;  %v1245_v55 = vrot.slane %v1237_v38, 3  ;;  %v1364_v6 = vrot.slane %v1355_v26, 4  ;;  %v1361_v4 = vrot.slane %v1353_v40, 4 }
 0x1e3   :  { %v1021_v22 = vstv %s1651_s8  ;;  %v1083_v37 = vstv %s1656_s9 }
 0x1e4   :  { %v3197_v44 = vsel %vm718_vm2, %v1247_v20, %v1248_v63  ;;  %v3200_v19 = vsel %vm718_vm2, %v1244_v46, %v1245_v55  ;;  %v3203_v28 = vsel %vm871_vm3, %v1363_v61, %v1364_v6  ;;  %v3206_v9 = vsel %vm871_vm3, %v1360_v42, %v1361_v4 }
 0x1e5   :  { %1344 = vrot.lane.b32.xlu1 %v1341_v32, %s1753_s4  ;;  %v1023_v21 = vmul.f32 %v1021_v22, %v2880_v14  ;;  %v1022_v53 = vmul.f32 %v1021_v22, %v2884_v12  ;;  %v1085_v32 = vmul.f32 %v1083_v37, %v2880_v14  ;;  %v1084_v0 = vmul.f32 %v1083_v37, %v2884_v12 }
 0x1e6   :  { %1342 = vrot.lane.b32.xlu0 %v1338_v15, %s1753_s4 }
 0x1e7   :  { %v1089_v10 = vrot.slane %v1085_v32, 1  ;;  %v1088_v60 = vrot.slane %v1084_v0, 1 }
 0x1e9   :  { %1388 = vrot.lane.b32.xlu1 %v1385_v16, %s1751_s7 }
 0x1ea   :  { %1386 = vrot.lane.b32.xlu0 %v1382_v45, %s1751_s7 }
 0x1ed   :  { %1412 = vrot.lane.b32.xlu1 %v1409_v58, %s1750_s6 }
 0x1ee   :  { %1410 = vrot.lane.b32.xlu0 %v1406_v25, %s1750_s6 }
 0x1f1   :  { %1436 = vrot.lane.b32.xlu1 %v1433_v3, %s1752_s30 }
 0x1f2   :  { %1434 = vrot.lane.b32.xlu0 %v1430_v1, %s1752_s30  ;;  %s1661_s30 = sld [smem:[#allocation2 + $0x2c]] }
 0x1f5   :  { %1460 = vrot.lane.b32.xlu1 %v1457_v48, %s1753_s4 }
 0x1f6   :  { %1458 = vrot.lane.b32.xlu0 %v1454_v57, %s1753_s4  ;;  %s1676_s4 = sld [smem:[#allocation5 + $0x2]] }
 0x1f8   :  { %v1159_v47 = vstv %s1661_s30 }
 0x1f9   :  { %v1161_v58 = vmul.f32 %v1159_v47, %v2880_v14  ;;  %v1160_v3 = vmul.f32 %v1159_v47, %v2884_v12 }
 0x1fb   :  { %v1165_v34 = vrot.slane %v1161_v58, 2  ;;  %v1164_v26 = vrot.slane %v1160_v3, 2 }
 0x218   :  { %v1035_v59 = vpop.permute.xlu1 %1034 }
 0x219   :  { %v1033_v39 = vpop.permute.xlu0 %1032  ;;  %v1039_v17 = vadd.f32 %v1035_v59, %v1023_v21 }
 0x21a   :  { %v1038_v56 = vadd.f32 %v1033_v39, %v1022_v53 }
 0x21c   :  { %v1049_v50 = vpop.permute.xlu1 %1048 }
 0x21d   :  { %v1047_v54 = vpop.permute.xlu0 %1046  ;;  %v1053_v30 = vadd.f32 %v1049_v50, %v1039_v17 }
 0x21e   :  { %v1052_v11 = vadd.f32 %v1047_v54, %v1038_v56 }
 0x220   :  { %v1063_v5 = vpop.permute.xlu1 %1062 }
 0x221   :  { %v1061_v8 = vpop.permute.xlu0 %1060  ;;  %v1067_v52 = vadd.f32 %v1063_v5, %v1053_v30 }
 0x222   :  { %v1066_v23 = vadd.f32 %v1061_v8, %v1052_v11 }
 0x224   :  { %v1077_v33 = vpop.permute.xlu1 %1076 }
 0x225   :  { %v1075_v29 = vpop.permute.xlu0 %1074  ;;  %v1081_v15 = vadd.f32 %v1077_v33, %v1067_v52 }
 0x226   :  { %v1080_v62 = vadd.f32 %v1075_v29, %v1066_v23 }
 0x227   :  { %v1093_v49 = vadd.f32 %v1089_v10, %v1081_v15 }
 0x228   :  { %v1105_v27 = vpop.permute.xlu1 %1104  ;;  %v1092_v13 = vadd.f32 %v1088_v60, %v1080_v62 }
 0x229   :  { %v1103_v18 = vpop.permute.xlu0 %1102  ;;  %v1109_v7 = vadd.f32 %v1105_v27, %v1093_v49 }
 0x22a   :  { %v1108_v51 = vadd.f32 %v1103_v18, %v1092_v13 }
 0x22c   :  { %v1121_v31 = vpop.permute.xlu1 %1120 }
 0x22d   :  { %v1119_v43 = vpop.permute.xlu0 %1118  ;;  %v1125_v36 = vadd.f32 %v1121_v31, %v1109_v7 }
 0x22e   :  { %v1124_v2 = vadd.f32 %v1119_v43, %v1108_v51 }
 0x230   :  { %v1137_v24 = vpop.permute.xlu1 %1136 }
 0x231   :  { %v1135_v35 = vpop.permute.xlu0 %1134  ;;  %v1141_v16 = vadd.f32 %v1137_v24, %v1125_v36  ;;  %v1467_v36 = vstv %s1676_s4 }
 0x232   :  { %v1140_v25 = vadd.f32 %v1135_v35, %v1124_v2 }
 0x234   :  { %v1153_v41 = vpop.permute.xlu1 %1152 }
 0x235   :  { %v1151_v45 = vpop.permute.xlu0 %1150  ;;  %v1157_v1 = vadd.f32 %v1153_v41, %v1141_v16  ;;  %v1477_v16 = vstv %s1678_s10 }
 0x236   :  { %v1156_v48 = vadd.f32 %v1151_v45, %v1140_v25 }
 0x237   :  { %v1169_v40 = vadd.f32 %v1165_v34, %v1157_v1  ;;  %v1491_v1 = vstv %s1679_s11 }
 0x238   :  { %v1181_v57 = vpop.permute.xlu1 %1180  ;;  %v1168_v20 = vadd.f32 %v1164_v26, %v1156_v48  ;;  %v1517_v48 = vstv %s1681_s12 }
 0x239   :  { %v1179_v38 = vpop.permute.xlu0 %1178  ;;  %v1185_v42 = vadd.f32 %v1181_v57, %v1169_v40  ;;  %v1533_v40 = vstv %s1682_s13 }
 0x23a   :  { %v1184_v63 = vadd.f32 %v1179_v38, %v1168_v20 }
 0x23c   :  { %v1197_v46 = vpop.permute.xlu1 %1196 }
 0x23d   :  { %v1195_v61 = vpop.permute.xlu0 %1194  ;;  %v1201_v6 = vadd.f32 %v1197_v46, %v1185_v42 }
 0x23e   :  { %v1200_v59 = vadd.f32 %v1195_v61, %v1184_v63  ;;  %v1561_v63 = vstv %s1684_s14 }
 0x240   :  { %v1213_v55 = vpop.permute.xlu1 %1212 }
 0x241   :  { %v1211_v4 = vpop.permute.xlu0 %1210  ;;  %v1217_v14 = vadd.f32 %v1213_v55, %v1201_v6 }
 0x242   :  { %v1216_v39 = vadd.f32 %v1211_v4, %v1200_v59 }
 0x244   :  { %v1229_v50 = vpop.permute.xlu1 %1228 }
 0x245   :  { %v1233_v12 = vadd.f32 %v1229_v50, %v1217_v14  ;;  %v1227_v54 = vpop.permute.xlu0 %1226  ;;  %v1577_v14 = vstv %s1685_s15 }
 0x246   :  { %v1232_v22 = vadd.f32 %v1227_v54, %v1216_v39 }
 0x247   :  { %v1253_v5 = vadd.f32 %v3197_v44, %v1233_v12 }
 0x248   :  { %v1252_v21 = vadd.f32 %v3200_v19, %v1232_v22 }
 0x24b   :  { %v1273_v8 = vpop.permute.xlu1 %1272 }
 0x24c   :  { %v1271_v53 = vpop.permute.xlu0 %1270  ;;  %v1277_v33 = vadd.f32 %v1273_v8, %v1253_v5  ;;  %v1505_v8 = vstv %s1680_s17 }
 0x24d   :  { %v1276_v37 = vadd.f32 %v1271_v53, %v1252_v21  ;;  %v1471_v21 = vstv %s1677_s16 }
 0x24f   :  { %v1297_v17 = vpop.permute.xlu1 %1296 }
 0x250   :  { %v1295_v56 = vpop.permute.xlu0 %1294  ;;  %v1301_v29 = vadd.f32 %v1297_v17, %v1277_v33 }
 0x251   :  { %v1300_v52 = vadd.f32 %v1295_v56, %v1276_v37 }
 0x253   :  { %v1321_v30 = vpop.permute.xlu1 %1320 }
 0x254   :  { %v1319_v11 = vpop.permute.xlu0 %1318  ;;  %v1325_v32 = vadd.f32 %v1321_v30, %v1301_v29 }
 0x255   :  { %v1324_v23 = vadd.f32 %v1319_v11, %v1300_v52 }
 0x257   :  { %v1345_v27 = vpop.permute.xlu1 %1344 }
 0x258   :  { %v1349_v0 = vadd.f32 %v1345_v27, %v1325_v32  ;;  %v1343_v15 = vpop.permute.xlu0 %1342 }
 0x259   :  { %v1348_v18 = vadd.f32 %v1343_v15, %v1324_v23 }
 0x25a   :  { %v1369_v44 = vadd.f32 %v3203_v28, %v1349_v0 }
 0x25b   :  { %v1389_v62 = vpop.permute.xlu1 %1388  ;;  %v1368_v19 = vadd.f32 %v3206_v9, %v1348_v18  ;;  %v1549_v18 = vstv %s1683_s18 }
 0x25c   :  { %v1387_v10 = vpop.permute.xlu0 %1386  ;;  %v1393_v49 = vadd.f32 %v1389_v62, %v1369_v44 }
 0x25d   :  { %v1392_v43 = vadd.f32 %v1387_v10, %v1368_v19 }
 0x25f   :  { %v1413_v60 = vpop.permute.xlu1 %1412 }
 0x260   :  { %v1411_v31 = vpop.permute.xlu0 %1410  ;;  %v1417_v24 = vadd.f32 %v1413_v60, %v1393_v49 }
 0x261   :  { %v1416_v35 = vadd.f32 %v1411_v31, %v1392_v43 }
 0x263   :  { %v1437_v13 = vpop.permute.xlu1 %1436 }
 0x264   :  { %v1435_v7 = vpop.permute.xlu0 %1434  ;;  %v1441_v51 = vadd.f32 %v1437_v13, %v1417_v24 }
 0x265   :  { %v1440_v47 = vadd.f32 %v1435_v7, %v1416_v35 }
 0x267   :  { %v1461_v28 = vpop.permute.xlu1 %1460 }
 0x268   :  { %v1465_v2 = vadd.f32 %v1461_v28, %v1441_v51  ;;  %v1459_v41 = vpop.permute.xlu0 %1458 }
 0x269   :  { %v1464_v9 = vadd.f32 %v1459_v41, %v1440_v47 }
 0x26a   :  { %v3228_v45 = vadd.f32 %v1467_v36, %v1465_v2 }
 0x26b   :  { %v3230_v58 = vadd.f32 %v1467_v36, %v1464_v9 }
 0x26c   :  { %v1479_v25 = vmul.f32 %v1477_v16, %v3228_v45  ;;  %v1493_v57 = vmul.f32 %v1491_v1, %v3228_v45  ;;  %v1519_v34 = vmul.f32 %v1517_v48, %v3228_v45  ;;  %v1535_v46 = vmul.f32 %v1533_v40, %v3228_v45 }
 0x26d   :  { %v1478_v3 = vmul.f32 %v1477_v16, %v3230_v58  ;;  %v1492_v38 = vmul.f32 %v1491_v1, %v3230_v58  ;;  %v1518_v26 = vmul.f32 %v1517_v48, %v3230_v58  ;;  %v1534_v42 = vmul.f32 %v1533_v40, %v3230_v58 }
 0x26e   :  { %1484 = vrot.lane.b32.xlu1 %v1479_v25, %s1751_s7  ;;  %v1523_v20 = vrot.slane %v1519_v34, 1  ;;  %v1539_v55 = vrot.slane %v1535_v46, 1  ;;  %v1563_v6 = vmul.f32 %v1561_v63, %v3228_v45  ;;  %v1562_v59 = vmul.f32 %v1561_v63, %v3230_v58 }
 0x26f   :  { %1482 = vrot.lane.b32.xlu0 %v1478_v3, %s1751_s7  ;;  %v1522_v61 = vrot.slane %v1518_v26, 1  ;;  %v1538_v4 = vrot.slane %v1534_v42, 1  ;;  %v1579_v50 = vmul.f32 %v1577_v14, %v3228_v45  ;;  %v1578_v54 = vmul.f32 %v1577_v14, %v3230_v58 }
 0x270   :  { %v1567_v39 = vrot.slane %v1563_v6, 2  ;;  %v1566_v12 = vrot.slane %v1562_v59, 2  ;;  %v1473_v17 = vmul.f32 %v1471_v21, %v3228_v45  ;;  %v1507_v33 = vmul.f32 %v1505_v8, %v3228_v45 }
 0x271   :  { %v1583_v22 = vrot.slane %v1579_v50, 2  ;;  %v1582_v5 = vrot.slane %v1578_v54, 2  ;;  %v1472_v37 = vmul.f32 %v1471_v21, %v3230_v58  ;;  %v1506_v30 = vmul.f32 %v1505_v8, %v3230_v58 }
 0x272   :  { %1498 = vrot.lane.b32.xlu1 %v1493_v57, %s1750_s6  ;;  %v1511_v27 = vrot.slane %v1507_v33, 1  ;;  %v1551_v60 = vmul.f32 %v1549_v18, %v3228_v45  ;;  %v1550_v31 = vmul.f32 %v1549_v18, %v3230_v58 }
 0x273   :  { %1496 = vrot.lane.b32.xlu0 %v1492_v38, %s1750_s6  ;;  %v1510_v15 = vrot.slane %v1506_v30, 1 }
 0x274   :  { %v1555_v35 = vrot.slane %v1551_v60, 2  ;;  %v1554_v47 = vrot.slane %v1550_v31, 2 }
 0x276   :  { %1526 = vrot.lane.b32.xlu1 %v1523_v20, %s1751_s7 }
 0x277   :  { %1524 = vrot.lane.b32.xlu0 %v1522_v61, %s1751_s7 }
 0x27a   :  { %1542 = vrot.lane.b32.xlu1 %v1539_v55, %s1750_s6 }
 0x27b   :  { %1540 = vrot.lane.b32.xlu0 %v1538_v4, %s1750_s6 }
 0x27e   :  { %1570 = vrot.lane.b32.xlu1 %v1567_v39, %s1751_s7 }
 0x27f   :  { %1568 = vrot.lane.b32.xlu0 %v1566_v12, %s1751_s7  ;;  %s1754_s7 = smov [#allocation7]  }
 0x280   :  { %s1604_s19 = sshll.u32 %s1754_s7, 4  ;;  %s1605_s19 = int_to_ptr.vmem [resolvable:$true] %s1604_s19 }
 0x281   :  { %s1720_s20 = scalar_lea.vmem %s1605_s19, 128  ;;  %p1725_p11 = scmp.lt.s32.totalorder %s1605_s19, %s1605_s19 }
 0x282   :  { %1586 = vrot.lane.b32.xlu1 %v1583_v22, %s1750_s6  ;;  %p1721_p10 = scmp.ne.s32.totalorder %s1605_s19, %s1720_s20  ;;  %p1726_p12 = scmp.lt.s32.totalorder %s1720_s20, %s1720_s20 }
 0x283   :  { %1584 = vrot.lane.b32.xlu0 %v1582_v5, %s1750_s6  ;;  %s1686_s6 = sld [smem:[#allocation5 + $0x3]] }
 0x284   :  { %p1727_p13 = por %p1726_p12, %p1725_p11 }
 0x286   :  { %p1728_p0 = pnand %p1727_p13, %p1721_p10 }
 0x289   :  { %v1593_v25 = vstv %s1686_s6 }
 0x2e0   :  { %v1485_v53 = vpop.permute.xlu1 %1484 }
 0x2e1   :  { %v1483_v56 = vpop.permute.xlu0 %1482  ;;  %v1489_v29 = vadd.f32 %v1485_v53, %v1473_v17 }
 0x2e2   :  { %v1488_v11 = vadd.f32 %v1483_v56, %v1472_v37 }
 0x2e4   :  { %v1499_v52 = vpop.permute.xlu1 %1498 }
 0x2e5   :  { %v1503_v32 = vadd.f32 %v1499_v52, %v1489_v29  ;;  %v1497_v23 = vpop.permute.xlu0 %1496 }
 0x2e6   :  { %v1502_v0 = vadd.f32 %v1497_v23, %v1488_v11 }
 0x2e7   :  { %v1515_v44 = vadd.f32 %v1511_v27, %v1503_v32 }
 0x2e8   :  { %v1527_v62 = vpop.permute.xlu1 %1526  ;;  %v1514_v19 = vadd.f32 %v1510_v15, %v1502_v0 }
 0x2e9   :  { %v1525_v10 = vpop.permute.xlu0 %1524  ;;  %v1531_v49 = vadd.f32 %v1527_v62, %v1515_v44 }
 0x2ea   :  { %v1530_v43 = vadd.f32 %v1525_v10, %v1514_v19 }
 0x2ec   :  { %v1543_v13 = vpop.permute.xlu1 %1542 }
 0x2ed   :  { %v1547_v24 = vadd.f32 %v1543_v13, %v1531_v49  ;;  %v1541_v7 = vpop.permute.xlu0 %1540 }
 0x2ee   :  { %v1546_v51 = vadd.f32 %v1541_v7, %v1530_v43 }
 0x2ef   :  { %v1559_v36 = vadd.f32 %v1555_v35, %v1547_v24 }
 0x2f0   :  { %v1571_v28 = vpop.permute.xlu1 %1570  ;;  %v1558_v2 = vadd.f32 %v1554_v47, %v1546_v51 }
 0x2f1   :  { %v1569_v41 = vpop.permute.xlu0 %1568  ;;  %v1575_v9 = vadd.f32 %v1571_v28, %v1559_v36 }
 0x2f2   :  { %v1574_v16 = vadd.f32 %v1569_v41, %v1558_v2 }
 0x2f4   :  { %v1587_v3 = vpop.permute.xlu1 %1586 }
 0x2f5   :  { %v1591_v45 = vadd.f32 %v1587_v3, %v1575_v9  ;;  %v1585_v1 = vpop.permute.xlu0 %1584 }
 0x2f6   :  { %v1590_v58 = vadd.f32 %v1585_v1, %v1574_v16 }
 0x2f7   :  { %v1595_v48 = vadd.f32 %v1593_v25, %v1591_v45 }
 0x2f8   :  { %v1594_v57 = vadd.f32 %v1593_v25, %v1590_v58 }
 0x2f9   :  { %1598 = vst.msk [vmem:[#allocation7 + $0x4] sm:$0xf] %vm1596_vm4, %v1595_v48 }
 0x2fa   :  { %1597 = vst.msk [vmem:[#allocation7] sm:$0xf] %vm1596_vm4, %v1594_v57 }
 0x2fb   :  { %1731 = shalt.err (!%p1728_p0)
}
 0x2fc   :  { %s1732_s21 = scalar_lea.hbm %s3277_s3, 128 }
 0x2fd   :  { %p1733_p1 = scmp.ne.s32.totalorder %s3277_s3, %s1732_s21  ;;  %p1736_p2 = scmp.lt.u32.totalorder %s1732_s21, %s3277_s3 }
 0x2ff   :  { %p1738_p3 = pnand %p1736_p2, %p1733_p1 }
 0x301   :  { %1741 = shalt.err (!%p1738_p3)
}
 0x302   :  { %s1755_s26 = smov 64   ;;  %s1756_s27 = smov 4  }
 0x303   :  { %1610 = dma.vmem_to_hbm [thread:$0]  %s1605_s19, 128, %s3277_s3, [#allocation3], %s1755_s26, %s1755_s26, %s1756_s27  }
 0x304   :  { %1746 = dma.done.wait [#allocation3], 128  }
 0x305   :  { %1747 = vsyncadd [#allocation3], 4294967168 }
 0x306   :  { %1614 = vsyncpa [#allocation3], 1 }
 0x307   :  { %1615 = vsyncpa [#allocation4], 1 }
 0x308   :  { %1616 = vsyncpa [#allocation6], 1 }

</bundles_post_ra>
